<compile_context>
chip_gen: v6e
topology: v6e:2x2x1
jax: 0.10.0
libtpu: 0.0.40
codegen_flags: <defaults>
</compile_context>

<pallas_src>
import math
import functools

import numpy as np
import jax
import jax.numpy as jnp
from jax.experimental import pallas as pl
from jax.experimental.pallas import tpu as pltpu


# -----------------------------------------------------------------------------
# Pallas kernel: tiled matmul + bias + activation (the hot path for every layer)
# -----------------------------------------------------------------------------
def _mm_bias_act_kernel(x_ref, w_ref, b_ref, o_ref, acc_ref, *, act):
    @pl.when(pl.program_id(2) == 0)
    def _():
        acc_ref[...] = jnp.zeros_like(acc_ref)

    acc_ref[...] += jnp.dot(x_ref[...], w_ref[...],
                            preferred_element_type=jnp.float32)

    @pl.when(pl.program_id(2) == pl.num_programs(2) - 1)
    def _():
        y = acc_ref[...] + b_ref[...]              # b_ref is (1, tn), broadcasts
        if act == "relu":
            y = jnp.maximum(y, 0.0)
        elif act == "sigmoid":
            # exp goes to the EUP; approx reciprocal also EUP -> frees VALU slots.
            y = pl.reciprocal(1.0 + jnp.exp(-y), approx=True)
        o_ref[...] = y.astype(o_ref.dtype)


_TM, _TN, _TK = 256, 512, 512      # v7x-safe tile budget (<< 32 MiB scoped VMEM)


def _rup(v, m):
    return ((v + m - 1) // m) * m


def _pick_tile(dim, max_tile, align):
    """Return (tile, padded_dim): tile % align == 0, padded_dim % tile == 0."""
    d = _rup(dim, align)
    t = max((min(d, max_tile) // align) * align, align)
    while d % t != 0:
        t -= align
    return t, d


def matmul_bias_act(x, w, b, act="none"):
    """x:(M,K) @ w:(K,N) + b:(N,) with optional relu/sigmoid. bf16 MXU, f32 out."""
    M, K = x.shape
    K2, N = w.shape
    assert K == K2, (x.shape, w.shape)

    tm, Mp = _pick_tile(M, _TM, 8)
    tn, Np = _pick_tile(N, _TN, 128)
    tk, Kp = _pick_tile(K, _TK, 128)

    xb = jnp.pad(x.astype(jnp.bfloat16), ((0, Mp - M), (0, Kp - K)))
    wb = jnp.pad(w.astype(jnp.bfloat16), ((0, Kp - K), (0, Np - N)))
    bb = jnp.pad(b.astype(jnp.float32).reshape(1, N), ((0, 0), (0, Np - N)))

    grid = (Mp // tm, Np // tn, Kp // tk)
    cost = pl.CostEstimate(
        flops=2 * Mp * Np * Kp,
        transcendentals=Mp * Np if act == "sigmoid" else 0,
        bytes_accessed=Mp * Kp * 2 + Kp * Np * 2 + Mp * Np * 4 + Np * 4,
    )

    out = pl.pallas_call(
        functools.partial(_mm_bias_act_kernel, act=act),
        out_shape=jax.ShapeDtypeStruct((Mp, Np), jnp.float32),
        grid_spec=pltpu.PrefetchScalarGridSpec(
            num_scalar_prefetch=0,
            grid=grid,
            in_specs=[
                pl.BlockSpec((tm, tk), lambda i, j, k: (i, k)),
                pl.BlockSpec((tk, tn), lambda i, j, k: (k, j)),
                pl.BlockSpec((1, tn), lambda i, j, k: (0, j)),
            ],
            out_specs=pl.BlockSpec((tm, tn), lambda i, j, k: (i, j)),
            scratch_shapes=[pltpu.VMEM((tm, tn), jnp.float32)],
        ),
        compiler_params=pltpu.CompilerParams(
            dimension_semantics=("parallel", "parallel", "arbitrary")),
        cost_estimate=cost,
    )(xb, wb, bb)
    return out[:M, :N]


# -----------------------------------------------------------------------------
# im2col helpers (channels-last; column order matches PyTorch weight.reshape)
# -----------------------------------------------------------------------------
def im2col_1d(x, ksize, pad):
    # x: (B, T, C) -> (B*T, C*ksize), column index = c*ksize + k
    B, T, C = x.shape
    if ksize == 1:
        return x.reshape(B * T, C)
    xp = jnp.pad(x, ((0, 0), (pad, pad), (0, 0)))
    cols = jnp.stack([xp[:, k:k + T, :] for k in range(ksize)], axis=-1)  # (B,T,C,K)
    return cols.reshape(B * T, C * ksize)


def im2col_2d(x, ksize, pad):
    # x: (B, H, W, C) -> (B*H*W, C*K*K), column index = c*K*K + kh*K + kw
    B, H, W, C = x.shape
    if ksize == 1:
        return x.reshape(B * H * W, C)
    xp = jnp.pad(x, ((0, 0), (pad, pad), (pad, pad), (0, 0)))
    taps = [xp[:, kh:kh + H, kw:kw + W, :]
            for kh in range(ksize) for kw in range(ksize)]
    cols = jnp.stack(taps, axis=-1)                                   # (B,H,W,C,K*K)
    return cols.reshape(B * H * W, C * ksize * ksize)


def conv1d_weight_to_matrix(w, groups):
    """PyTorch Conv1d weight (Cout, Cin/groups, K) -> dense (Cin*K, Cout) matrix
    (block-diagonal across groups) matching im2col_1d column order."""
    # TODO(synk): block-diagonal dense grouped weights waste groups x MXU FLOPs;
    # at production H1 each group should become its own grid step / matmul.
    w = np.asarray(w)
    Cout, Cin_g, K = w.shape
    Cin = Cin_g * groups
    Cout_g = Cout // groups
    W = np.zeros((Cin * K, Cout), dtype=np.float32)
    for g in range(groups):
        for co_l in range(Cout_g):
            co = g * Cout_g + co_l
            for ci_l in range(Cin_g):
                ci = g * Cin_g + ci_l
                W[ci * K:(ci + 1) * K, co] = w[co, ci_l, :]
    return jnp.asarray(W)


def apply_conv1d(x, Wm, b, ksize, pad, act):
    # x: (B, T, Cin) -> (B, T, Cout)   (channels-last, no transposes)
    B, T, _ = x.shape
    cols = im2col_1d(x, ksize, pad)
    y = matmul_bias_act(cols, Wm, b, act)
    return y.reshape(B, T, Wm.shape[1])


def apply_conv2d(x, Wm, b, ksize, pad, act):
    # x: (B, H, W, Cin) -> (B, H, W, Cout)
    B, H, W, _ = x.shape
    cols = im2col_2d(x, ksize, pad)
    y = matmul_bias_act(cols, Wm, b, act)
    return y.reshape(B, H, W, Wm.shape[1])


# -----------------------------------------------------------------------------
# Boundary-matching sample mask (parameter setup, numpy, same math as PyTorch)
# -----------------------------------------------------------------------------
def _get_interp1d_bin_mask(seg_xmin, seg_xmax, tscale, num_sample, num_sample_perbin):
    plen = float(seg_xmax - seg_xmin)
    plen_sample = plen / (num_sample * num_sample_perbin - 1.0)
    total_sample = [seg_xmin + plen_sample * ii
                    for ii in range(num_sample * num_sample_perbin)]
    p_mask = []
    for idx in range(num_sample):
        bin_samples = total_sample[idx * num_sample_perbin:(idx + 1) * num_sample_perbin]
        bin_vector = np.zeros([tscale])
        for sample in bin_samples:
            sample_upper = math.ceil(sample)
            sample_decimal, sample_down = math.modf(sample)
            if 0 <= int(sample_down) <= tscale - 1:
                bin_vector[int(sample_down)] += 1 - sample_decimal
            if 0 <= int(sample_upper) <= tscale - 1:
                bin_vector[int(sample_upper)] += sample_decimal
        p_mask.append(bin_vector / num_sample_perbin)
    return np.stack(p_mask, axis=1)


def get_interp1d_mask(tscale, num_sample, num_sample_perbin, prop_boundary_ratio):
    # TODO(synk): ~half the (t_start > t_end) columns are exactly zero; a
    # scalar-prefetch block list could skip those tiles.  For now the mask is
    # merely streamed tile-by-tile by the grid, never resident whole in VMEM.
    mask_mat = []
    for end_index in range(tscale):
        mask_mat_vector = []
        for start_index in range(tscale):
            if start_index <= end_index:
                p_xmin = start_index
                p_xmax = end_index + 1
                center_len = float(p_xmax - p_xmin) + 1
                sample_xmin = p_xmin - center_len * prop_boundary_ratio
                sample_xmax = p_xmax + center_len * prop_boundary_ratio
                p_mask = _get_interp1d_bin_mask(sample_xmin, sample_xmax, tscale,
                                                num_sample, num_sample_perbin)
            else:
                p_mask = np.zeros([tscale, num_sample])
            mask_mat_vector.append(p_mask)
        mask_mat.append(np.stack(mask_mat_vector, axis=2))
    mask_mat = np.stack(mask_mat, axis=3).astype(np.float32)  # (T, N, T_start, T_end)
    return jnp.asarray(mask_mat.reshape(tscale, -1))          # (T, N*T*T)


# -----------------------------------------------------------------------------
# Parameter initialization (deterministic, synthetic)
# -----------------------------------------------------------------------------
def init_params(key, *, Cin, T, H1, H2, H3, num_sample, groups, prop_boundary_ratio,
                num_sample_perbin):
    keys = iter(jax.random.split(key, 64))

    def w(shape, scale=0.05):
        return np.asarray(scale * jax.random.normal(next(keys), shape, dtype=jnp.float32))

    def bias(n):
        return 0.01 * jax.random.normal(next(keys), (n,), dtype=jnp.float32)

    p = {}
    # x_1d_b : grouped conv3 -> relu -> grouped conv3 -> relu
    p["b0_W"] = conv1d_weight_to_matrix(w((H1, Cin // groups, 3)), groups)
    p["b0_b"] = bias(H1)
    p["b1_W"] = conv1d_weight_to_matrix(w((H1, H1 // groups, 3)), groups)
    p["b1_b"] = bias(H1)

    # Fused s0 / e0 / p0 branch: all conv3 on `base`, concatenated along out-channels
    s0 = conv1d_weight_to_matrix(w((H1, H1 // groups, 3)), groups)   # (3*H1, H1)
    e0 = conv1d_weight_to_matrix(w((H1, H1 // groups, 3)), groups)
    p0 = conv1d_weight_to_matrix(w((H1, H1, 3)), 1)
    p["sep_W"] = jnp.concatenate([s0, e0, p0], axis=1)               # (3*H1, 3*H1)
    p["sep_b"] = jnp.concatenate([bias(H1), bias(H1), bias(H1)])

    # Fused s1 / e1 1x1 heads: block-diagonal (2*H1, 2) weight, sigmoid
    s1 = np.asarray(conv1d_weight_to_matrix(w((1, H1, 1)), 1))       # (H1, 1)
    e1 = np.asarray(conv1d_weight_to_matrix(w((1, H1, 1)), 1))
    se = np.zeros((2 * H1, 2), dtype=np.float32)
    se[:H1, 0:1] = s1
    se[H1:, 1:2] = e1
    p["se_W"] = jnp.asarray(se)
    p["se_b"] = jnp.concatenate([bias(1), bias(1)])

    # x_3d_p : Conv3d(H1, H3, kernel=(num_sample,1,1), stride=(num_sample,1,1)) -> relu
    w3d = w((H3, H1, num_sample))                                    # (Cout, Cin, N)
    p["c3d_W"] = jnp.asarray(w3d.reshape(H3, H1 * num_sample).T)
    p["c3d_b"] = bias(H3)

    # x_2d_p : conv1 -> relu -> conv3 -> relu -> conv3 -> relu -> conv1 -> sigmoid
    p["q0_W"] = jnp.asarray(w((H2, H3, 1, 1)).reshape(H2, -1).T)
    p["q0_b"] = bias(H2)
    p["q1_W"] = jnp.asarray(w((H2, H2, 3, 3)).reshape(H2, -1).T)
    p["q1_b"] = bias(H2)
    p["q2_W"] = jnp.asarray(w((H2, H2, 3, 3)).reshape(H2, -1).T)
    p["q2_b"] = bias(H2)
    p["q3_W"] = jnp.asarray(w((2, H2, 1, 1)).reshape(2, -1).T)
    p["q3_b"] = bias(2)

    # boundary-matching sample mask (non-trainable parameter)
    p["sample_mask"] = get_interp1d_mask(T, num_sample, num_sample_perbin,
                                         prop_boundary_ratio)
    return p


# -----------------------------------------------------------------------------
# Forward pass (channels-last throughout)
# -----------------------------------------------------------------------------
def bmn_forward(x, params, *, num_sample):
    """x: (B, T, Cin) -> (confidence_map (B,2,T,T), start (B,T), end (B,T))"""
    B, T, _ = x.shape
    H1 = params["b0_b"].shape[0]
    H3 = params["c3d_b"].shape[0]

    # x_1d_b  (channels-last: the PyTorch permute(0,2,1) is absorbed into layout)
    h = apply_conv1d(x, params["b0_W"], params["b0_b"], 3, 1, "relu")
    base = apply_conv1d(h, params["b1_W"], params["b1_b"], 3, 1, "relu")   # (B,T,H1)
    # TODO(synk): dropout (p=0.1) is identity at inference; not implemented as a kernel.

    # Fused s0/e0/p0 (one lane-dense matmul over the shared im2col of `base`)
    sep = apply_conv1d(base, params["sep_W"], params["sep_b"], 3, 1, "relu")  # (B,T,3*H1)

    # Fused s1/e1 sigmoid heads (2 output lanes instead of two N=1 calls)
    se = matmul_bias_act(sep[:, :, :2 * H1].reshape(B * T, 2 * H1),
                         params["se_W"], params["se_b"], act="sigmoid")       # (B*T, 2)
    se = se.reshape(B, T, 2)
    start = se[:, :, 0]
    end = se[:, :, 1]

    # x_1d_p output channels
    conf1d = sep[:, :, 2 * H1:]                                               # (B,T,H1)

    # boundary matching layer: (B*H1, T) @ (T, N*T*T) -> (B,H1,N,T,T)
    conf_cht = jnp.transpose(conf1d, (0, 2, 1)).reshape(B * H1, T)
    bm = matmul_bias_act(conf_cht, params["sample_mask"],
                         jnp.zeros((params["sample_mask"].shape[1],), jnp.float32),
                         act="none")
    bm = bm.reshape(B, H1, num_sample, T, T)

    # x_3d_p : Conv3d kernel (N,1,1) stride (N,1,1) -> per-(t1,t2) matmul over (H1,N)
    bm_cols = jnp.transpose(bm, (0, 3, 4, 1, 2)).reshape(B * T * T, H1 * num_sample)
    y3 = matmul_bias_act(bm_cols, params["c3d_W"], params["c3d_b"], act="relu")
    y3 = y3.reshape(B, T, T, H3)                                              # channels-last

    # x_2d_p (channels-last 2D convs)
    q = apply_conv2d(y3, params["q0_W"], params["q0_b"], 1, 0, "relu")
    q = apply_conv2d(q, params["q1_W"], params["q1_b"], 3, 1, "relu")
    q = apply_conv2d(q, params["q2_W"], params["q2_b"], 3, 1, "relu")
    cm = apply_conv2d(q, params["q3_W"], params["q3_b"], 1, 0, "sigmoid")     # (B,T,T,2)
    confidence_map = jnp.transpose(cm, (0, 3, 1, 2))                          # (B,2,T,T)

    return confidence_map, start, end


# -----------------------------------------------------------------------------
if __name__ == "__main__":
    # Small synthetic configuration (kwargs of the original module, scaled down).
    B = 2           # batch
    T = 16          # video_length
    Cin = 16        # input_size
    groups = 4
    H1, H2, H3 = 32, 16, 32           # hidden_1d / hidden_2d / hidden_3d
    num_sample = 8
    num_sample_perbin = 3
    prop_boundary_ratio = 0.5

    key = jax.random.PRNGKey(0)
    k_x, k_p = jax.random.split(key)

    x = jax.random.normal(k_x, (B, T, Cin), dtype=jnp.float32)
    params = init_params(k_p, Cin=Cin, T=T, H1=H1, H2=H2, H3=H3,
                         num_sample=num_sample, groups=groups,
                         prop_boundary_ratio=prop_boundary_ratio,
                         num_sample_perbin=num_sample_perbin)

    fwd = jax.jit(functools.partial(bmn_forward, num_sample=num_sample))
    confidence_map, start, end = fwd(x, params)
    jax.block_until_ready((confidence_map, start, end))

    assert confidence_map.shape == (B, 2, T, T), confidence_map.shape
    assert start.shape == (B, T) and end.shape == (B, T)
    assert bool(jnp.all(jnp.isfinite(confidence_map)))
    assert bool(jnp.all(jnp.isfinite(start))) and bool(jnp.all(jnp.isfinite(end)))
    print("KERNEL_OK")
</pallas_src>

<mosaic_0001>
module attributes {stable_mosaic.version = 11 : i64} {
  func.func @_mm_bias_act_kernel(%arg0: i32, %arg1: i32, %arg2: i32, %arg3: memref<32x128xbf16, #tpu.memory_space<vmem>>, %arg4: memref<128x128xbf16, #tpu.memory_space<vmem>>, %arg5: memref<1x128xf32, #tpu.memory_space<vmem>>, %arg6: memref<32x128xf32, #tpu.memory_space<vmem>>, %arg7: memref<32x128xf32, #tpu.memory_space<vmem>>) attributes {dimension_semantics = [#tpu.dimension_semantics<parallel>, #tpu.dimension_semantics<parallel>, #tpu.dimension_semantics<arbitrary>], iteration_bounds = array<i64: 1, 1, 1>, scalar_prefetch = 0 : i64, scratch_operands = 1 : i64, tpu.core_type = #tpu.core_type<tc>, window_params = [{transform_indices = @transform_0, window_bounds = array<i64: 32, 128>}, {transform_indices = @transform_1, window_bounds = array<i64: 128, 128>}, {transform_indices = @transform_2, window_bounds = array<i64: 1, 128>}, {transform_indices = @transform_3, window_bounds = array<i64: 32, 128>}]} {
    %c0_i32 = arith.constant 0 : i32
    %0 = arith.cmpi eq, %arg2, %c0_i32 : i32
    %1 = arith.extui %0 : i1 to i32
    %c0_i32_0 = arith.constant 0 : i32
    %2 = arith.cmpi ne, %1, %c0_i32_0 : i32
    scf.if %2 {
      %cst_10 = arith.constant 0.000000e+00 : f32
      %12 = vector.broadcast %cst_10 : f32 to vector<32x128xf32>
      %c0_11 = arith.constant 0 : index
      %c0_12 = arith.constant 0 : index
      %13 = vector.load %arg7[%c0_11, %c0_12] : memref<32x128xf32, #tpu.memory_space<vmem>>, vector<32x128xf32>
      tpu.vector_store %arg7[%c0_11, %c0_12], %12 {strides = array<i32>} : memref<32x128xf32, #tpu.memory_space<vmem>>, vector<32x128xf32>,
    } else {
    }
    %c0 = arith.constant 0 : index
    %c0_1 = arith.constant 0 : index
    %3 = vector.load %arg7[%c0, %c0_1] : memref<32x128xf32, #tpu.memory_space<vmem>>, vector<32x128xf32>
    %c0_2 = arith.constant 0 : index
    %c0_3 = arith.constant 0 : index
    %4 = vector.load %arg3[%c0_2, %c0_3] : memref<32x128xbf16, #tpu.memory_space<vmem>>, vector<32x128xbf16>
    %c0_4 = arith.constant 0 : index
    %c0_5 = arith.constant 0 : index
    %5 = vector.load %arg4[%c0_4, %c0_5] : memref<128x128xbf16, #tpu.memory_space<vmem>>, vector<128x128xbf16>
    %cst = arith.constant dense<0.000000e+00> : vector<32x128xf32>
    %6 = tpu.matmul %4, %5, %cst {dimension_numbers = #tpu.dot_dimension_numbers<[1], [0], [0], [1], [0, 0, 1, 1], [], []>} : vector<32x128xbf16>, vector<128x128xbf16>, vector<32x128xf32> -> vector<32x128xf32>
    %7 = arith.addf %3, %6 : vector<32x128xf32>
    %c0_6 = arith.constant 0 : index
    %c0_7 = arith.constant 0 : index
    %8 = vector.load %arg7[%c0_6, %c0_7] : memref<32x128xf32, #tpu.memory_space<vmem>>, vector<32x128xf32>
    tpu.vector_store %arg7[%c0_6, %c0_7], %7 {strides = array<i32>} : memref<32x128xf32, #tpu.memory_space<vmem>>, vector<32x128xf32>,
    %c0_i32_8 = arith.constant 0 : i32
    %9 = arith.cmpi eq, %arg2, %c0_i32_8 : i32
    %10 = arith.extui %9 : i1 to i32
    %c0_i32_9 = arith.constant 0 : i32
    %11 = arith.cmpi ne, %10, %c0_i32_9 : i32
    scf.if %11 {
      %c0_10 = arith.constant 0 : index
      %c0_11 = arith.constant 0 : index
      %12 = vector.load %arg7[%c0_10, %c0_11] : memref<32x128xf32, #tpu.memory_space<vmem>>, vector<32x128xf32>
      %c0_12 = arith.constant 0 : index
      %c0_13 = arith.constant 0 : index
      %13 = vector.load %arg5[%c0_12, %c0_13] : memref<1x128xf32, #tpu.memory_space<vmem>>, vector<1x128xf32>
      %14 = vector.broadcast %13 : vector<1x128xf32> to vector<32x128xf32>
      %15 = arith.addf %12, %14 : vector<32x128xf32>
      %cst_14 = arith.constant 0.000000e+00 : f32
      %16 = vector.broadcast %cst_14 : f32 to vector<32x128xf32>
      %17 = arith.maximumf %15, %16 : vector<32x128xf32>
      %c0_15 = arith.constant 0 : index
      %c0_16 = arith.constant 0 : index
      %18 = vector.load %arg6[%c0_15, %c0_16] : memref<32x128xf32, #tpu.memory_space<vmem>>, vector<32x128xf32>
      tpu.vector_store %arg6[%c0_15, %c0_16], %17 {strides = array<i32>} : memref<32x128xf32, #tpu.memory_space<vmem>>, vector<32x128xf32>,
    } else {
    }
    return
  }
  func.func @transform_0(%arg0: i32, %arg1: i32, %arg2: i32) -> (i32, i32) {
    %c0_i32 = arith.constant 0 : i32
    return %arg0, %arg2 : i32, i32
  }
  func.func @transform_1(%arg0: i32, %arg1: i32, %arg2: i32) -> (i32, i32) {
    %c0_i32 = arith.constant 0 : i32
    return %arg2, %arg1 : i32, i32
  }
  func.func @transform_2(%arg0: i32, %arg1: i32, %arg2: i32) -> (i32, i32) {
    %c0_i32 = arith.constant 0 : i32
    %c0_i32_0 = arith.constant 0 : i32
    return %c0_i32, %arg1 : i32, i32
  }
  func.func @transform_3(%arg0: i32, %arg1: i32, %arg2: i32) -> (i32, i32) {
    %c0_i32 = arith.constant 0 : i32
    return %arg0, %arg1 : i32, i32
  }
}

module attributes {stable_mosaic.version = 11 : i64} {
  func.func @_mm_bias_act_kernel(%arg0: i32, %arg1: i32, %arg2: i32, %arg3: memref<64x128xbf16, #tpu.memory_space<vmem>>, %arg4: memref<128x512xbf16, #tpu.memory_space<vmem>>, %arg5: memref<1x512xf32, #tpu.memory_space<vmem>>, %arg6: memref<64x512xf32, #tpu.memory_space<vmem>>, %arg7: memref<64x512xf32, #tpu.memory_space<vmem>>) attributes {dimension_semantics = [#tpu.dimension_semantics<parallel>, #tpu.dimension_semantics<parallel>, #tpu.dimension_semantics<arbitrary>], iteration_bounds = array<i64: 1, 4, 1>, scalar_prefetch = 0 : i64, scratch_operands = 1 : i64, tpu.core_type = #tpu.core_type<tc>, window_params = [{transform_indices = @transform_0, window_bounds = array<i64: 64, 128>}, {transform_indices = @transform_1, window_bounds = array<i64: 128, 512>}, {transform_indices = @transform_2, window_bounds = array<i64: 1, 512>}, {transform_indices = @transform_3, window_bounds = array<i64: 64, 512>}]} {
    %c0_i32 = arith.constant 0 : i32
    %0 = arith.cmpi eq, %arg2, %c0_i32 : i32
    %1 = arith.extui %0 : i1 to i32
    %c0_i32_0 = arith.constant 0 : i32
    %2 = arith.cmpi ne, %1, %c0_i32_0 : i32
    scf.if %2 {
      %cst_10 = arith.constant 0.000000e+00 : f32
      %12 = vector.broadcast %cst_10 : f32 to vector<64x512xf32>
      %c0_11 = arith.constant 0 : index
      %c0_12 = arith.constant 0 : index
      %13 = vector.load %arg7[%c0_11, %c0_12] : memref<64x512xf32, #tpu.memory_space<vmem>>, vector<64x512xf32>
      tpu.vector_store %arg7[%c0_11, %c0_12], %12 {strides = array<i32>} : memref<64x512xf32, #tpu.memory_space<vmem>>, vector<64x512xf32>,
    } else {
    }
    %c0 = arith.constant 0 : index
    %c0_1 = arith.constant 0 : index
    %3 = vector.load %arg7[%c0, %c0_1] : memref<64x512xf32, #tpu.memory_space<vmem>>, vector<64x512xf32>
    %c0_2 = arith.constant 0 : index
    %c0_3 = arith.constant 0 : index
    %4 = vector.load %arg3[%c0_2, %c0_3] : memref<64x128xbf16, #tpu.memory_space<vmem>>, vector<64x128xbf16>
    %c0_4 = arith.constant 0 : index
    %c0_5 = arith.constant 0 : index
    %5 = vector.load %arg4[%c0_4, %c0_5] : memref<128x512xbf16, #tpu.memory_space<vmem>>, vector<128x512xbf16>
    %cst = arith.constant dense<0.000000e+00> : vector<64x512xf32>
    %6 = tpu.matmul %4, %5, %cst {dimension_numbers = #tpu.dot_dimension_numbers<[1], [0], [0], [1], [0, 0, 1, 1], [], []>} : vector<64x128xbf16>, vector<128x512xbf16>, vector<64x512xf32> -> vector<64x512xf32>
    %7 = arith.addf %3, %6 : vector<64x512xf32>
    %c0_6 = arith.constant 0 : index
    %c0_7 = arith.constant 0 : index
    %8 = vector.load %arg7[%c0_6, %c0_7] : memref<64x512xf32, #tpu.memory_space<vmem>>, vector<64x512xf32>
    tpu.vector_store %arg7[%c0_6, %c0_7], %7 {strides = array<i32>} : memref<64x512xf32, #tpu.memory_space<vmem>>, vector<64x512xf32>,
    %c0_i32_8 = arith.constant 0 : i32
    %9 = arith.cmpi eq, %arg2, %c0_i32_8 : i32
    %10 = arith.extui %9 : i1 to i32
    %c0_i32_9 = arith.constant 0 : i32
    %11 = arith.cmpi ne, %10, %c0_i32_9 : i32
    scf.if %11 {
      %c0_10 = arith.constant 0 : index
      %c0_11 = arith.constant 0 : index
      %12 = vector.load %arg7[%c0_10, %c0_11] : memref<64x512xf32, #tpu.memory_space<vmem>>, vector<64x512xf32>
      %c0_12 = arith.constant 0 : index
      %c0_13 = arith.constant 0 : index
      %13 = vector.load %arg5[%c0_12, %c0_13] : memref<1x512xf32, #tpu.memory_space<vmem>>, vector<1x512xf32>
      %14 = vector.broadcast %13 : vector<1x512xf32> to vector<64x512xf32>
      %15 = arith.addf %12, %14 : vector<64x512xf32>
      %c0_14 = arith.constant 0 : index
      %c0_15 = arith.constant 0 : index
      %16 = vector.load %arg6[%c0_14, %c0_15] : memref<64x512xf32, #tpu.memory_space<vmem>>, vector<64x512xf32>
      tpu.vector_store %arg6[%c0_14, %c0_15], %15 {strides = array<i32>} : memref<64x512xf32, #tpu.memory_space<vmem>>, vector<64x512xf32>,
    } else {
    }
    return
  }
  func.func @transform_0(%arg0: i32, %arg1: i32, %arg2: i32) -> (i32, i32) {
    %c0_i32 = arith.constant 0 : i32
    return %arg0, %arg2 : i32, i32
  }
  func.func @transform_1(%arg0: i32, %arg1: i32, %arg2: i32) -> (i32, i32) {
    %c0_i32 = arith.constant 0 : i32
    return %arg2, %arg1 : i32, i32
  }
  func.func @transform_2(%arg0: i32, %arg1: i32, %arg2: i32) -> (i32, i32) {
    %c0_i32 = arith.constant 0 : i32
    %c0_i32_0 = arith.constant 0 : i32
    return %c0_i32, %arg1 : i32, i32
  }
  func.func @transform_3(%arg0: i32, %arg1: i32, %arg2: i32) -> (i32, i32) {
    %c0_i32 = arith.constant 0 : i32
    return %arg0, %arg1 : i32, i32
  }
}

module attributes {stable_mosaic.version = 11 : i64} {
  func.func @_mm_bias_act_kernel(%arg0: i32, %arg1: i32, %arg2: i32, %arg3: memref<256x256xbf16, #tpu.memory_space<vmem>>, %arg4: memref<256x128xbf16, #tpu.memory_space<vmem>>, %arg5: memref<1x128xf32, #tpu.memory_space<vmem>>, %arg6: memref<256x128xf32, #tpu.memory_space<vmem>>, %arg7: memref<256x128xf32, #tpu.memory_space<vmem>>) attributes {dimension_semantics = [#tpu.dimension_semantics<parallel>, #tpu.dimension_semantics<parallel>, #tpu.dimension_semantics<arbitrary>], iteration_bounds = array<i64: 2, 1, 1>, scalar_prefetch = 0 : i64, scratch_operands = 1 : i64, tpu.core_type = #tpu.core_type<tc>, window_params = [{transform_indices = @transform_0, window_bounds = array<i64: 256, 256>}, {transform_indices = @transform_1, window_bounds = array<i64: 256, 128>}, {transform_indices = @transform_2, window_bounds = array<i64: 1, 128>}, {transform_indices = @transform_3, window_bounds = array<i64: 256, 128>}]} {
    %c0_i32 = arith.constant 0 : i32
    %0 = arith.cmpi eq, %arg2, %c0_i32 : i32
    %1 = arith.extui %0 : i1 to i32
    %c0_i32_0 = arith.constant 0 : i32
    %2 = arith.cmpi ne, %1, %c0_i32_0 : i32
    scf.if %2 {
      %cst_10 = arith.constant 0.000000e+00 : f32
      %12 = vector.broadcast %cst_10 : f32 to vector<256x128xf32>
      %c0_11 = arith.constant 0 : index
      %c0_12 = arith.constant 0 : index
      %13 = vector.load %arg7[%c0_11, %c0_12] : memref<256x128xf32, #tpu.memory_space<vmem>>, vector<256x128xf32>
      tpu.vector_store %arg7[%c0_11, %c0_12], %12 {strides = array<i32>} : memref<256x128xf32, #tpu.memory_space<vmem>>, vector<256x128xf32>,
    } else {
    }
    %c0 = arith.constant 0 : index
    %c0_1 = arith.constant 0 : index
    %3 = vector.load %arg7[%c0, %c0_1] : memref<256x128xf32, #tpu.memory_space<vmem>>, vector<256x128xf32>
    %c0_2 = arith.constant 0 : index
    %c0_3 = arith.constant 0 : index
    %4 = vector.load %arg3[%c0_2, %c0_3] : memref<256x256xbf16, #tpu.memory_space<vmem>>, vector<256x256xbf16>
    %c0_4 = arith.constant 0 : index
    %c0_5 = arith.constant 0 : index
    %5 = vector.load %arg4[%c0_4, %c0_5] : memref<256x128xbf16, #tpu.memory_space<vmem>>, vector<256x128xbf16>
    %cst = arith.constant dense<0.000000e+00> : vector<256x128xf32>
    %6 = tpu.matmul %4, %5, %cst {dimension_numbers = #tpu.dot_dimension_numbers<[1], [0], [0], [1], [0, 0, 1, 1], [], []>} : vector<256x256xbf16>, vector<256x128xbf16>, vector<256x128xf32> -> vector<256x128xf32>
    %7 = arith.addf %3, %6 : vector<256x128xf32>
    %c0_6 = arith.constant 0 : index
    %c0_7 = arith.constant 0 : index
    %8 = vector.load %arg7[%c0_6, %c0_7] : memref<256x128xf32, #tpu.memory_space<vmem>>, vector<256x128xf32>
    tpu.vector_store %arg7[%c0_6, %c0_7], %7 {strides = array<i32>} : memref<256x128xf32, #tpu.memory_space<vmem>>, vector<256x128xf32>,
    %c0_i32_8 = arith.constant 0 : i32
    %9 = arith.cmpi eq, %arg2, %c0_i32_8 : i32
    %10 = arith.extui %9 : i1 to i32
    %c0_i32_9 = arith.constant 0 : i32
    %11 = arith.cmpi ne, %10, %c0_i32_9 : i32
    scf.if %11 {
      %c0_10 = arith.constant 0 : index
      %c0_11 = arith.constant 0 : index
      %12 = vector.load %arg7[%c0_10, %c0_11] : memref<256x128xf32, #tpu.memory_space<vmem>>, vector<256x128xf32>
      %c0_12 = arith.constant 0 : index
      %c0_13 = arith.constant 0 : index
      %13 = vector.load %arg5[%c0_12, %c0_13] : memref<1x128xf32, #tpu.memory_space<vmem>>, vector<1x128xf32>
      %14 = vector.broadcast %13 : vector<1x128xf32> to vector<256x128xf32>
      %15 = arith.addf %12, %14 : vector<256x128xf32>
      %cst_14 = arith.constant 0.000000e+00 : f32
      %16 = vector.broadcast %cst_14 : f32 to vector<256x128xf32>
      %17 = arith.maximumf %15, %16 : vector<256x128xf32>
      %c0_15 = arith.constant 0 : index
      %c0_16 = arith.constant 0 : index
      %18 = vector.load %arg6[%c0_15, %c0_16] : memref<256x128xf32, #tpu.memory_space<vmem>>, vector<256x128xf32>
      tpu.vector_store %arg6[%c0_15, %c0_16], %17 {strides = array<i32>} : memref<256x128xf32, #tpu.memory_space<vmem>>, vector<256x128xf32>,
    } else {
    }
    return
  }
  func.func @transform_0(%arg0: i32, %arg1: i32, %arg2: i32) -> (i32, i32) {
    %c0_i32 = arith.constant 0 : i32
    return %arg0, %arg2 : i32, i32
  }
  func.func @transform_1(%arg0: i32, %arg1: i32, %arg2: i32) -> (i32, i32) {
    %c0_i32 = arith.constant 0 : i32
    return %arg2, %arg1 : i32, i32
  }
  func.func @transform_2(%arg0: i32, %arg1: i32, %arg2: i32) -> (i32, i32) {
    %c0_i32 = arith.constant 0 : i32
    %c0_i32_0 = arith.constant 0 : i32
    return %c0_i32, %arg1 : i32, i32
  }
  func.func @transform_3(%arg0: i32, %arg1: i32, %arg2: i32) -> (i32, i32) {
    %c0_i32 = arith.constant 0 : i32
    return %arg0, %arg1 : i32, i32
  }
}

module attributes {stable_mosaic.version = 11 : i64} {
  func.func @_mm_bias_act_kernel(%arg0: i32, %arg1: i32, %arg2: i32, %arg3: memref<256x128xbf16, #tpu.memory_space<vmem>>, %arg4: memref<128x128xbf16, #tpu.memory_space<vmem>>, %arg5: memref<1x128xf32, #tpu.memory_space<vmem>>, %arg6: memref<256x128xf32, #tpu.memory_space<vmem>>, %arg7: memref<256x128xf32, #tpu.memory_space<vmem>>) attributes {dimension_semantics = [#tpu.dimension_semantics<parallel>, #tpu.dimension_semantics<parallel>, #tpu.dimension_semantics<arbitrary>], iteration_bounds = array<i64: 2, 1, 1>, scalar_prefetch = 0 : i64, scratch_operands = 1 : i64, tpu.core_type = #tpu.core_type<tc>, window_params = [{transform_indices = @transform_0, window_bounds = array<i64: 256, 128>}, {transform_indices = @transform_1, window_bounds = array<i64: 128, 128>}, {transform_indices = @transform_2, window_bounds = array<i64: 1, 128>}, {transform_indices = @transform_3, window_bounds = array<i64: 256, 128>}]} {
    %c0_i32 = arith.constant 0 : i32
    %0 = arith.cmpi eq, %arg2, %c0_i32 : i32
    %1 = arith.extui %0 : i1 to i32
    %c0_i32_0 = arith.constant 0 : i32
    %2 = arith.cmpi ne, %1, %c0_i32_0 : i32
    scf.if %2 {
      %cst_10 = arith.constant 0.000000e+00 : f32
      %12 = vector.broadcast %cst_10 : f32 to vector<256x128xf32>
      %c0_11 = arith.constant 0 : index
      %c0_12 = arith.constant 0 : index
      %13 = vector.load %arg7[%c0_11, %c0_12] : memref<256x128xf32, #tpu.memory_space<vmem>>, vector<256x128xf32>
      tpu.vector_store %arg7[%c0_11, %c0_12], %12 {strides = array<i32>} : memref<256x128xf32, #tpu.memory_space<vmem>>, vector<256x128xf32>,
    } else {
    }
    %c0 = arith.constant 0 : index
    %c0_1 = arith.constant 0 : index
    %3 = vector.load %arg7[%c0, %c0_1] : memref<256x128xf32, #tpu.memory_space<vmem>>, vector<256x128xf32>
    %c0_2 = arith.constant 0 : index
    %c0_3 = arith.constant 0 : index
    %4 = vector.load %arg3[%c0_2, %c0_3] : memref<256x128xbf16, #tpu.memory_space<vmem>>, vector<256x128xbf16>
    %c0_4 = arith.constant 0 : index
    %c0_5 = arith.constant 0 : index
    %5 = vector.load %arg4[%c0_4, %c0_5] : memref<128x128xbf16, #tpu.memory_space<vmem>>, vector<128x128xbf16>
    %cst = arith.constant dense<0.000000e+00> : vector<256x128xf32>
    %6 = tpu.matmul %4, %5, %cst {dimension_numbers = #tpu.dot_dimension_numbers<[1], [0], [0], [1], [0, 0, 1, 1], [], []>} : vector<256x128xbf16>, vector<128x128xbf16>, vector<256x128xf32> -> vector<256x128xf32>
    %7 = arith.addf %3, %6 : vector<256x128xf32>
    %c0_6 = arith.constant 0 : index
    %c0_7 = arith.constant 0 : index
    %8 = vector.load %arg7[%c0_6, %c0_7] : memref<256x128xf32, #tpu.memory_space<vmem>>, vector<256x128xf32>
    tpu.vector_store %arg7[%c0_6, %c0_7], %7 {strides = array<i32>} : memref<256x128xf32, #tpu.memory_space<vmem>>, vector<256x128xf32>,
    %c0_i32_8 = arith.constant 0 : i32
    %9 = arith.cmpi eq, %arg2, %c0_i32_8 : i32
    %10 = arith.extui %9 : i1 to i32
    %c0_i32_9 = arith.constant 0 : i32
    %11 = arith.cmpi ne, %10, %c0_i32_9 : i32
    scf.if %11 {
      %c0_10 = arith.constant 0 : index
      %c0_11 = arith.constant 0 : index
      %12 = vector.load %arg7[%c0_10, %c0_11] : memref<256x128xf32, #tpu.memory_space<vmem>>, vector<256x128xf32>
      %c0_12 = arith.constant 0 : index
      %c0_13 = arith.constant 0 : index
      %13 = vector.load %arg5[%c0_12, %c0_13] : memref<1x128xf32, #tpu.memory_space<vmem>>, vector<1x128xf32>
      %14 = vector.broadcast %13 : vector<1x128xf32> to vector<256x128xf32>
      %15 = arith.addf %12, %14 : vector<256x128xf32>
      %cst_14 = arith.constant 0.000000e+00 : f32
      %16 = vector.broadcast %cst_14 : f32 to vector<256x128xf32>
      %17 = arith.maximumf %15, %16 : vector<256x128xf32>
      %c0_15 = arith.constant 0 : index
      %c0_16 = arith.constant 0 : index
      %18 = vector.load %arg6[%c0_15, %c0_16] : memref<256x128xf32, #tpu.memory_space<vmem>>, vector<256x128xf32>
      tpu.vector_store %arg6[%c0_15, %c0_16], %17 {strides = array<i32>} : memref<256x128xf32, #tpu.memory_space<vmem>>, vector<256x128xf32>,
    } else {
    }
    return
  }
  func.func @transform_0(%arg0: i32, %arg1: i32, %arg2: i32) -> (i32, i32) {
    %c0_i32 = arith.constant 0 : i32
    return %arg0, %arg2 : i32, i32
  }
  func.func @transform_1(%arg0: i32, %arg1: i32, %arg2: i32) -> (i32, i32) {
    %c0_i32 = arith.constant 0 : i32
    return %arg2, %arg1 : i32, i32
  }
  func.func @transform_2(%arg0: i32, %arg1: i32, %arg2: i32) -> (i32, i32) {
    %c0_i32 = arith.constant 0 : i32
    %c0_i32_0 = arith.constant 0 : i32
    return %c0_i32, %arg1 : i32, i32
  }
  func.func @transform_3(%arg0: i32, %arg1: i32, %arg2: i32) -> (i32, i32) {
    %c0_i32 = arith.constant 0 : i32
    return %arg0, %arg1 : i32, i32
  }
}

module attributes {stable_mosaic.version = 11 : i64} {
  func.func @_mm_bias_act_kernel(%arg0: i32, %arg1: i32, %arg2: i32, %arg3: memref<256x128xbf16, #tpu.memory_space<vmem>>, %arg4: memref<128x128xbf16, #tpu.memory_space<vmem>>, %arg5: memref<1x128xf32, #tpu.memory_space<vmem>>, %arg6: memref<256x128xf32, #tpu.memory_space<vmem>>, %arg7: memref<256x128xf32, #tpu.memory_space<vmem>>) attributes {dimension_semantics = [#tpu.dimension_semantics<parallel>, #tpu.dimension_semantics<parallel>, #tpu.dimension_semantics<arbitrary>], iteration_bounds = array<i64: 2, 1, 1>, scalar_prefetch = 0 : i64, scratch_operands = 1 : i64, tpu.core_type = #tpu.core_type<tc>, window_params = [{transform_indices = @transform_0, window_bounds = array<i64: 256, 128>}, {transform_indices = @transform_1, window_bounds = array<i64: 128, 128>}, {transform_indices = @transform_2, window_bounds = array<i64: 1, 128>}, {transform_indices = @transform_3, window_bounds = array<i64: 256, 128>}]} {
    %c0_i32 = arith.constant 0 : i32
    %0 = arith.cmpi eq, %arg2, %c0_i32 : i32
    %1 = arith.extui %0 : i1 to i32
    %c0_i32_0 = arith.constant 0 : i32
    %2 = arith.cmpi ne, %1, %c0_i32_0 : i32
    scf.if %2 {
      %cst_10 = arith.constant 0.000000e+00 : f32
      %12 = vector.broadcast %cst_10 : f32 to vector<256x128xf32>
      %c0_11 = arith.constant 0 : index
      %c0_12 = arith.constant 0 : index
      %13 = vector.load %arg7[%c0_11, %c0_12] : memref<256x128xf32, #tpu.memory_space<vmem>>, vector<256x128xf32>
      tpu.vector_store %arg7[%c0_11, %c0_12], %12 {strides = array<i32>} : memref<256x128xf32, #tpu.memory_space<vmem>>, vector<256x128xf32>,
    } else {
    }
    %c0 = arith.constant 0 : index
    %c0_1 = arith.constant 0 : index
    %3 = vector.load %arg7[%c0, %c0_1] : memref<256x128xf32, #tpu.memory_space<vmem>>, vector<256x128xf32>
    %c0_2 = arith.constant 0 : index
    %c0_3 = arith.constant 0 : index
    %4 = vector.load %arg3[%c0_2, %c0_3] : memref<256x128xbf16, #tpu.memory_space<vmem>>, vector<256x128xbf16>
    %c0_4 = arith.constant 0 : index
    %c0_5 = arith.constant 0 : index
    %5 = vector.load %arg4[%c0_4, %c0_5] : memref<128x128xbf16, #tpu.memory_space<vmem>>, vector<128x128xbf16>
    %cst = arith.constant dense<0.000000e+00> : vector<256x128xf32>
    %6 = tpu.matmul %4, %5, %cst {dimension_numbers = #tpu.dot_dimension_numbers<[1], [0], [0], [1], [0, 0, 1, 1], [], []>} : vector<256x128xbf16>, vector<128x128xbf16>, vector<256x128xf32> -> vector<256x128xf32>
    %7 = arith.addf %3, %6 : vector<256x128xf32>
    %c0_6 = arith.constant 0 : index
    %c0_7 = arith.constant 0 : index
    %8 = vector.load %arg7[%c0_6, %c0_7] : memref<256x128xf32, #tpu.memory_space<vmem>>, vector<256x128xf32>
    tpu.vector_store %arg7[%c0_6, %c0_7], %7 {strides = array<i32>} : memref<256x128xf32, #tpu.memory_space<vmem>>, vector<256x128xf32>,
    %c0_i32_8 = arith.constant 0 : i32
    %9 = arith.cmpi eq, %arg2, %c0_i32_8 : i32
    %10 = arith.extui %9 : i1 to i32
    %c0_i32_9 = arith.constant 0 : i32
    %11 = arith.cmpi ne, %10, %c0_i32_9 : i32
    scf.if %11 {
      %c0_10 = arith.constant 0 : index
      %c0_11 = arith.constant 0 : index
      %12 = vector.load %arg7[%c0_10, %c0_11] : memref<256x128xf32, #tpu.memory_space<vmem>>, vector<256x128xf32>
      %c0_12 = arith.constant 0 : index
      %c0_13 = arith.constant 0 : index
      %13 = vector.load %arg5[%c0_12, %c0_13] : memref<1x128xf32, #tpu.memory_space<vmem>>, vector<1x128xf32>
      %14 = vector.broadcast %13 : vector<1x128xf32> to vector<256x128xf32>
      %15 = arith.addf %12, %14 : vector<256x128xf32>
      %cst_14 = arith.constant 0.000000e+00 : f32
      %16 = vector.broadcast %cst_14 : f32 to vector<256x128xf32>
      %17 = arith.subf %16, %15 : vector<256x128xf32>
      %18 = math.exp %17 : vector<256x128xf32>
      %cst_15 = arith.constant 1.000000e+00 : f32
      %19 = vector.broadcast %cst_15 : f32 to vector<256x128xf32>
      %20 = arith.addf %19, %18 : vector<256x128xf32>
      %21 = tpu.reciprocal %20 {approx = true} : vector<256x128xf32> -> vector<256x128xf32>
      %c0_16 = arith.constant 0 : index
      %c0_17 = arith.constant 0 : index
      %22 = vector.load %arg6[%c0_16, %c0_17] : memref<256x128xf32, #tpu.memory_space<vmem>>, vector<256x128xf32>
      tpu.vector_store %arg6[%c0_16, %c0_17], %21 {strides = array<i32>} : memref<256x128xf32, #tpu.memory_space<vmem>>, vector<256x128xf32>,
    } else {
    }
    return
  }
  func.func @transform_0(%arg0: i32, %arg1: i32, %arg2: i32) -> (i32, i32) {
    %c0_i32 = arith.constant 0 : i32
    return %arg0, %arg2 : i32, i32
  }
  func.func @transform_1(%arg0: i32, %arg1: i32, %arg2: i32) -> (i32, i32) {
    %c0_i32 = arith.constant 0 : i32
    return %arg2, %arg1 : i32, i32
  }
  func.func @transform_2(%arg0: i32, %arg1: i32, %arg2: i32) -> (i32, i32) {
    %c0_i32 = arith.constant 0 : i32
    %c0_i32_0 = arith.constant 0 : i32
    return %c0_i32, %arg1 : i32, i32
  }
  func.func @transform_3(%arg0: i32, %arg1: i32, %arg2: i32) -> (i32, i32) {
    %c0_i32 = arith.constant 0 : i32
    return %arg0, %arg1 : i32, i32
  }
}

module attributes {stable_mosaic.version = 11 : i64} {
  func.func @_mm_bias_act_kernel(%arg0: i32, %arg1: i32, %arg2: i32, %arg3: memref<32x128xbf16, #tpu.memory_space<vmem>>, %arg4: memref<128x128xbf16, #tpu.memory_space<vmem>>, %arg5: memref<1x128xf32, #tpu.memory_space<vmem>>, %arg6: memref<32x128xf32, #tpu.memory_space<vmem>>, %arg7: memref<32x128xf32, #tpu.memory_space<vmem>>) attributes {dimension_semantics = [#tpu.dimension_semantics<parallel>, #tpu.dimension_semantics<parallel>, #tpu.dimension_semantics<arbitrary>], iteration_bounds = array<i64: 1, 1, 1>, scalar_prefetch = 0 : i64, scratch_operands = 1 : i64, tpu.core_type = #tpu.core_type<tc>, window_params = [{transform_indices = @transform_0, window_bounds = array<i64: 32, 128>}, {transform_indices = @transform_1, window_bounds = array<i64: 128, 128>}, {transform_indices = @transform_2, window_bounds = array<i64: 1, 128>}, {transform_indices = @transform_3, window_bounds = array<i64: 32, 128>}]} {
    %c0_i32 = arith.constant 0 : i32
    %0 = arith.cmpi eq, %arg2, %c0_i32 : i32
    %1 = arith.extui %0 : i1 to i32
    %c0_i32_0 = arith.constant 0 : i32
    %2 = arith.cmpi ne, %1, %c0_i32_0 : i32
    scf.if %2 {
      %cst_10 = arith.constant 0.000000e+00 : f32
      %12 = vector.broadcast %cst_10 : f32 to vector<32x128xf32>
      %c0_11 = arith.constant 0 : index
      %c0_12 = arith.constant 0 : index
      %13 = vector.load %arg7[%c0_11, %c0_12] : memref<32x128xf32, #tpu.memory_space<vmem>>, vector<32x128xf32>
      tpu.vector_store %arg7[%c0_11, %c0_12], %12 {strides = array<i32>} : memref<32x128xf32, #tpu.memory_space<vmem>>, vector<32x128xf32>,
    } else {
    }
    %c0 = arith.constant 0 : index
    %c0_1 = arith.constant 0 : index
    %3 = vector.load %arg7[%c0, %c0_1] : memref<32x128xf32, #tpu.memory_space<vmem>>, vector<32x128xf32>
    %c0_2 = arith.constant 0 : index
    %c0_3 = arith.constant 0 : index
    %4 = vector.load %arg3[%c0_2, %c0_3] : memref<32x128xbf16, #tpu.memory_space<vmem>>, vector<32x128xbf16>
    %c0_4 = arith.constant 0 : index
    %c0_5 = arith.constant 0 : index
    %5 = vector.load %arg4[%c0_4, %c0_5] : memref<128x128xbf16, #tpu.memory_space<vmem>>, vector<128x128xbf16>
    %cst = arith.constant dense<0.000000e+00> : vector<32x128xf32>
    %6 = tpu.matmul %4, %5, %cst {dimension_numbers = #tpu.dot_dimension_numbers<[1], [0], [0], [1], [0, 0, 1, 1], [], []>} : vector<32x128xbf16>, vector<128x128xbf16>, vector<32x128xf32> -> vector<32x128xf32>
    %7 = arith.addf %3, %6 : vector<32x128xf32>
    %c0_6 = arith.constant 0 : index
    %c0_7 = arith.constant 0 : index
    %8 = vector.load %arg7[%c0_6, %c0_7] : memref<32x128xf32, #tpu.memory_space<vmem>>, vector<32x128xf32>
    tpu.vector_store %arg7[%c0_6, %c0_7], %7 {strides = array<i32>} : memref<32x128xf32, #tpu.memory_space<vmem>>, vector<32x128xf32>,
    %c0_i32_8 = arith.constant 0 : i32
    %9 = arith.cmpi eq, %arg2, %c0_i32_8 : i32
    %10 = arith.extui %9 : i1 to i32
    %c0_i32_9 = arith.constant 0 : i32
    %11 = arith.cmpi ne, %10, %c0_i32_9 : i32
    scf.if %11 {
      %c0_10 = arith.constant 0 : index
      %c0_11 = arith.constant 0 : index
      %12 = vector.load %arg7[%c0_10, %c0_11] : memref<32x128xf32, #tpu.memory_space<vmem>>, vector<32x128xf32>
      %c0_12 = arith.constant 0 : index
      %c0_13 = arith.constant 0 : index
      %13 = vector.load %arg5[%c0_12, %c0_13] : memref<1x128xf32, #tpu.memory_space<vmem>>, vector<1x128xf32>
      %14 = vector.broadcast %13 : vector<1x128xf32> to vector<32x128xf32>
      %15 = arith.addf %12, %14 : vector<32x128xf32>
      %cst_14 = arith.constant 0.000000e+00 : f32
      %16 = vector.broadcast %cst_14 : f32 to vector<32x128xf32>
      %17 = arith.subf %16, %15 : vector<32x128xf32>
      %18 = math.exp %17 : vector<32x128xf32>
      %cst_15 = arith.constant 1.000000e+00 : f32
      %19 = vector.broadcast %cst_15 : f32 to vector<32x128xf32>
      %20 = arith.addf %19, %18 : vector<32x128xf32>
      %21 = tpu.reciprocal %20 {approx = true} : vector<32x128xf32> -> vector<32x128xf32>
      %c0_16 = arith.constant 0 : index
      %c0_17 = arith.constant 0 : index
      %22 = vector.load %arg6[%c0_16, %c0_17] : memref<32x128xf32, #tpu.memory_space<vmem>>, vector<32x128xf32>
      tpu.vector_store %arg6[%c0_16, %c0_17], %21 {strides = array<i32>} : memref<32x128xf32, #tpu.memory_space<vmem>>, vector<32x128xf32>,
    } else {
    }
    return
  }
  func.func @transform_0(%arg0: i32, %arg1: i32, %arg2: i32) -> (i32, i32) {
    %c0_i32 = arith.constant 0 : i32
    return %arg0, %arg2 : i32, i32
  }
  func.func @transform_1(%arg0: i32, %arg1: i32, %arg2: i32) -> (i32, i32) {
    %c0_i32 = arith.constant 0 : i32
    return %arg2, %arg1 : i32, i32
  }
  func.func @transform_2(%arg0: i32, %arg1: i32, %arg2: i32) -> (i32, i32) {
    %c0_i32 = arith.constant 0 : i32
    %c0_i32_0 = arith.constant 0 : i32
    return %c0_i32, %arg1 : i32, i32
  }
  func.func @transform_3(%arg0: i32, %arg1: i32, %arg2: i32) -> (i32, i32) {
    %c0_i32 = arith.constant 0 : i32
    return %arg0, %arg1 : i32, i32
  }
}

</mosaic_0001>

<bundles_post_ra>
// kernel: bmn_forward.10
= control target key start
LH: loop header
LB: loop body
LE: loop exit
PB: predicated region body
PF: predicated region fallthrough
CT: control target
= control target key end

     0   :  { %s310_s1 = inlined_call_operand.vmem [shape: bf16[128,128], index: 1, kind: input, shape index: {}]   ;;  %s311_s0 = inlined_call_operand.vmem [shape: bf16[32,128], index: 0, kind: input, shape index: {}]   ;;  %s312_s2 = inlined_call_operand.vmem [shape: f32[1,128], index: 2, kind: input, shape index: {}]   ;;  %s313_s3 = inlined_call_operand.vmem [shape: f32[32,128], index: 3, kind: output, shape index: {}]  }
   0x1   :  { %v235_v0 = vld [vmem:[%s310_s1 + $0x38] sm:$0xff]   ;;  %v236_v1 = vld [vmem:[%s310_s1 + $0x30] sm:$0xff]   ;;  %v237_v2 = vld [vmem:[%s310_s1 + $0x28] sm:$0xff]  }
   0x2   :  { %215 = vmatprep.subr.bf16.mxu0 %v235_v0  ;;  %v238_v3 = vld [vmem:[%s310_s1 + $0x20] sm:$0xff]   ;;  %v239_v5 = vld [vmem:[%s310_s1 + $0x18] sm:$0xff]   ;;  %v240_v6 = vld [vmem:[%s310_s1 + $0x10] sm:$0xff]  }
   0x3   :  { %216 = vmatpush3.bf16.msra.mxu0 %v235_v0  ;;  %v243_v4 = vld [vmem:[%s311_s0] sm:$0xff]   ;;  %v241_v7 = vld [vmem:[%s310_s1 + $0x8] sm:$0xff]  }
   0x4   :  { %217 = vmatprep.subr.bf16.mxu0 %v236_v1  ;;  %231 = vmatprep.mubr.bf16.mxu0 %v243_v4  ;;  %v242_v8 = vld [vmem:[%s310_s1] sm:$0xff]   ;;  %v244_v9 = vld [vmem:[%s311_s0 + $0x8] sm:$0xff]  }
   0x5   :  { %v204_v10 = vld [vmem:[%s312_s2] ss:$0 sm:$0xff] }
   0x7   :  { %218 = vmatpush3.bf16.msra.mxu0 %v236_v1 }
   0x8   :  { %219 = vmatprep.subr.bf16.mxu0 %v237_v2 }
   0xb   :  { %220 = vmatpush3.bf16.msra.mxu0 %v237_v2 }
   0xc   :  { %221 = vmatprep.subr.bf16.mxu0 %v238_v3 }
   0xf   :  { %222 = vmatpush3.bf16.msra.mxu0 %v238_v3 }
  0x10   :  { %223 = vmatprep.subr.bf16.mxu0 %v239_v5 }
  0x13   :  { %224 = vmatpush3.bf16.msra.mxu0 %v239_v5 }
  0x14   :  { %225 = vmatprep.subr.bf16.mxu0 %v240_v6 }
  0x17   :  { %226 = vmatpush3.bf16.msra.mxu0 %v240_v6 }
  0x18   :  { %227 = vmatprep.subr.bf16.mxu0 %v241_v7 }
  0x1b   :  { %228 = vmatpush3.bf16.msra.mxu0 %v241_v7 }
  0x1c   :  { %229 = vmatprep.subr.bf16.mxu0 %v242_v8 }
  0x1f   :  { %230 = vmatpush3.bf16.msra.mxu0 %v242_v8 }
  0x22   :  { %232 = vmatmul.mubr.bf16.vlgmr.msra.gmra.mxu0 %v244_v9 }
  0xe2   :  { %v233_v11 = vpop.f32.mrf.mxu0 }
  0xe3   :  { %v180_v12 = vadd.f32 %v233_v11, %v204_v10 }
  0xe4   :  { %v141_v13 = vpop.f32.mrf.mxu0 }
  0xe5   :  { %v184_v14 = vmax.f32 %v180_v12, 0.0  ;;  %v178_v15 = vadd.f32 %v204_v10, %v141_v13 }
  0xe6   :  { %v234_v16 = vpop.f32.mrf.mxu0 }
  0xe7   :  { %188 = vst [vmem:[%s313_s3 + $0x10] sm:$0xff] %v184_v14  ;;  %v182_v17 = vmax.f32 %v178_v15, 0.0  ;;  %v181_v18 = vadd.f32 %v234_v16, %v204_v10 }
  0xe8   :  { %v144_v19 = vpop.f32.mrf.mxu0 }
  0xe9   :  { %186 = vst [vmem:[%s313_s3] sm:$0xff] %v182_v17  ;;  %v185_v20 = vmax.f32 %v181_v18, 0.0  ;;  %v179_v21 = vadd.f32 %v204_v10, %v144_v19 }
  0xeb   :  { %189 = vst [vmem:[%s313_s3 + $0x18] sm:$0xff] %v185_v20  ;;  %v183_v22 = vmax.f32 %v179_v21, 0.0 }
  0xed   :  { %187 = vst [vmem:[%s313_s3 + $0x8] sm:$0xff] %v183_v22 }

// kernel: bmn_forward.14
= control target key start
LH: loop header
LB: loop body
LE: loop exit
PB: predicated region body
PF: predicated region fallthrough
CT: control target
= control target key end

     0   :  { %s1355_s12 = smov 0   ;;  %s1357_s13 = smov 0   ;;  %s1697_s0 = inlined_call_operand.vmem [shape: bf16[64,128], index: 0, kind: input, shape index: {}]   ;;  %s1698_s1 = inlined_call_operand.vmem [shape: bf16[128,2048], index: 1, kind: input, shape index: {}]   ;;  %s1699_s2 = inlined_call_operand.vmem [shape: f32[1,2048], index: 2, kind: input, shape index: {}]   ;;  %s1700_s3 = inlined_call_operand.vmem [shape: f32[64,2048], index: 3, kind: output, shape index: {}]  }
   0x1   :  { %s1359_s14 = smov 0   ;;  %s1361_s15 = smov 0  }
   0x2   :  { %s1363_s16 = smov 0  }
   0x3 LB: > { %s28_s17 = sadd.s32 1, %s1328_s15  ;;  %s1146_s18 = sadd.s32 4294967295, %s1332_s16   ;;  %s1332_s16 = sphi %s1363_s16, %s13_s16   ;;  %s1328_s15 = sphi %s1361_s15, %s1705_s15   ;;  %s1324_s14 = sphi %s1359_s14, %s1704_s14   ;;  %s1320_s13 = sphi %s1357_s13, %s1703_s13   ;;  %s1316_s12 = sphi %s1355_s12, %s1702_s12  }
   0x4   : > { %p30_p0 = scmp.ge.s32.totalorder %s28_s17, 4  ;;  %p76_p1 = scmp.ne.s32.totalorder %s1320_s13, %s1316_s12 }
   0x5   : > { %p77_p2 = scmp.eq.s32.totalorder %s1332_s16, 0  ;;  %p134_p4 = scmp.eq.s32.totalorder %s1146_s18, 3 }
   0x6   : > { %s1707_s17 = smov (%p30_p0, %s28_s17), 0  ;;  %s69_s20 = sadd.s32 1, %s1320_s13 }
   0x7   : > { %p78_p3 = por %p77_p2, %p76_p1  ;;  %s65_s19 = ssub.s32 %s1328_s15, %s1707_s17 }
   0x8   : > { %p67_p5 = scmp.eq.s32.totalorder %s65_s19, 0  ;;  %p1390_p6 = por %p134_p4, %p76_p1 }
   0x9   : > { %p1150_p7 = scmp.ge.s32.totalorder %s1332_s16, 4 }
   0xa   : > { %s1395_s22 = scalar_select %p67_p5, %s1320_s13, %s69_s20  }
   0xb   : > { %168 = sbr.rel (%p1150_p7) target bundleno = 36 (0x24), region = 20 }
  0x10   : > { %171 = sbr.rel (!%p78_p3) target bundleno = 36 (0x24), region = 24  ;;  %s173_s23 = sand.u32 (%p78_p3), 1, %s1320_s13  }
  0x11   : > { %s1199_s24 = sshll.u32 (%p78_p3), %s1328_s15, 4  ;;  %s1151_s25 = sshll.u32 (%p78_p3), %s173_s23, 8 }
  0x12   : > { %s1403_s28 = scalar_lea.vmem (%p78_p3), %s1698_s1, %s1199_s24  ;;  %s1408_s29 = scalar_lea.vmem (%p78_p3), [#allocation3], %s1151_s25 }
  0x13   : > { %v194_v0 = vld [vmem:[%s1403_s28] sm:$0xff] (%p78_p3)  ;;  %v196_v1 = vld [vmem:[%s1403_s28 + $0x8] sm:$0xff] (%p78_p3) }
  0x14   : > { %v198_v2 = vld [vmem:[%s1403_s28 + $0x40] sm:$0xff] (%p78_p3)  ;;  %195 = vst [vmem:[%s1408_s29] sm:$0xff] (%p78_p3), %v194_v0  ;;  %197 = vst [vmem:[%s1408_s29 + $0x8] sm:$0xff] (%p78_p3), %v196_v1  ;;  %v200_v3 = vld [vmem:[%s1403_s28 + $0x48] sm:$0xff] (%p78_p3) }
  0x15   : > { %199 = vst [vmem:[%s1408_s29 + $0x10] sm:$0xff] %v198_v2  ;;  %v202_v4 = vld [vmem:[%s1403_s28 + $0x80] sm:$0xff]  ;;  %v204_v5 = vld [vmem:[%s1403_s28 + $0x88] sm:$0xff]  ;;  %201 = vst [vmem:[%s1408_s29 + $0x18] sm:$0xff] %v200_v3 }
  0x16   : > { %203 = vst [vmem:[%s1408_s29 + $0x20] sm:$0xff] %v202_v4  ;;  %205 = vst [vmem:[%s1408_s29 + $0x28] sm:$0xff] %v204_v5  ;;  %v206_v6 = vld [vmem:[%s1403_s28 + $0xc0] sm:$0xff]  ;;  %v208_v7 = vld [vmem:[%s1403_s28 + $0xc8] sm:$0xff] }
  0x17   : > { %v210_v8 = vld [vmem:[%s1403_s28 + $0x100] sm:$0xff]  ;;  %207 = vst [vmem:[%s1408_s29 + $0x30] sm:$0xff] %v206_v6  ;;  %209 = vst [vmem:[%s1408_s29 + $0x38] sm:$0xff] %v208_v7  ;;  %v212_v9 = vld [vmem:[%s1403_s28 + $0x108] sm:$0xff] }
  0x18   : > { %211 = vst [vmem:[%s1408_s29 + $0x40] sm:$0xff] %v210_v8  ;;  %v214_v10 = vld [vmem:[%s1403_s28 + $0x140] sm:$0xff]  ;;  %v216_v11 = vld [vmem:[%s1403_s28 + $0x148] sm:$0xff]  ;;  %213 = vst [vmem:[%s1408_s29 + $0x48] sm:$0xff] %v212_v9 }
  0x19   : > { %215 = vst [vmem:[%s1408_s29 + $0x50] sm:$0xff] %v214_v10  ;;  %217 = vst [vmem:[%s1408_s29 + $0x58] sm:$0xff] %v216_v11  ;;  %v218_v12 = vld [vmem:[%s1403_s28 + $0x180] sm:$0xff]  ;;  %v220_v13 = vld [vmem:[%s1403_s28 + $0x188] sm:$0xff] }
  0x1a   : > { %v222_v14 = vld [vmem:[%s1403_s28 + $0x1c0] sm:$0xff]  ;;  %219 = vst [vmem:[%s1408_s29 + $0x60] sm:$0xff] %v218_v12  ;;  %221 = vst [vmem:[%s1408_s29 + $0x68] sm:$0xff] %v220_v13  ;;  %v224_v15 = vld [vmem:[%s1403_s28 + $0x1c8] sm:$0xff] }
  0x1b   : > { %223 = vst [vmem:[%s1408_s29 + $0x70] sm:$0xff] %v222_v14  ;;  %v226_v16 = vld [vmem:[%s1403_s28 + $0x200] sm:$0xff]  ;;  %v228_v17 = vld [vmem:[%s1403_s28 + $0x208] sm:$0xff]  ;;  %225 = vst [vmem:[%s1408_s29 + $0x78] sm:$0xff] %v224_v15 }
  0x1c   : > { %227 = vst [vmem:[%s1408_s29 + $0x80] sm:$0xff] %v226_v16  ;;  %229 = vst [vmem:[%s1408_s29 + $0x88] sm:$0xff] %v228_v17  ;;  %v230_v18 = vld [vmem:[%s1403_s28 + $0x240] sm:$0xff]  ;;  %v232_v19 = vld [vmem:[%s1403_s28 + $0x248] sm:$0xff] }
  0x1d   : > { %v234_v20 = vld [vmem:[%s1403_s28 + $0x280] sm:$0xff]  ;;  %231 = vst [vmem:[%s1408_s29 + $0x90] sm:$0xff] %v230_v18  ;;  %233 = vst [vmem:[%s1408_s29 + $0x98] sm:$0xff] %v232_v19  ;;  %v236_v21 = vld [vmem:[%s1403_s28 + $0x288] sm:$0xff] }
  0x1e   : > { %235 = vst [vmem:[%s1408_s29 + $0xa0] sm:$0xff] %v234_v20  ;;  %v238_v22 = vld [vmem:[%s1403_s28 + $0x2c0] sm:$0xff]  ;;  %v240_v23 = vld [vmem:[%s1403_s28 + $0x2c8] sm:$0xff]  ;;  %237 = vst [vmem:[%s1408_s29 + $0xa8] sm:$0xff] %v236_v21 }
  0x1f   : > { %239 = vst [vmem:[%s1408_s29 + $0xb0] sm:$0xff] %v238_v22  ;;  %241 = vst [vmem:[%s1408_s29 + $0xb8] sm:$0xff] %v240_v23  ;;  %v242_v24 = vld [vmem:[%s1403_s28 + $0x300] sm:$0xff]  ;;  %v244_v25 = vld [vmem:[%s1403_s28 + $0x308] sm:$0xff] }
  0x20   : > { %v246_v26 = vld [vmem:[%s1403_s28 + $0x340] sm:$0xff]  ;;  %243 = vst [vmem:[%s1408_s29 + $0xc0] sm:$0xff] %v242_v24  ;;  %245 = vst [vmem:[%s1408_s29 + $0xc8] sm:$0xff] %v244_v25  ;;  %v248_v27 = vld [vmem:[%s1403_s28 + $0x348] sm:$0xff] }
  0x21   : > { %247 = vst [vmem:[%s1408_s29 + $0xd0] sm:$0xff] %v246_v26  ;;  %v250_v28 = vld [vmem:[%s1403_s28 + $0x380] sm:$0xff]  ;;  %v252_v29 = vld [vmem:[%s1403_s28 + $0x388] sm:$0xff]  ;;  %249 = vst [vmem:[%s1408_s29 + $0xd8] sm:$0xff] %v248_v27 }
  0x22   : > { %251 = vst [vmem:[%s1408_s29 + $0xe0] sm:$0xff] %v250_v28  ;;  %253 = vst [vmem:[%s1408_s29 + $0xe8] sm:$0xff] %v252_v29  ;;  %v254_v30 = vld [vmem:[%s1403_s28 + $0x3c0] sm:$0xff]  ;;  %v256_v31 = vld [vmem:[%s1403_s28 + $0x3c8] sm:$0xff] }
  0x23   : > { %255 = vst [vmem:[%s1408_s29 + $0xf0] sm:$0xff] %v254_v30  ;;  %257 = vst [vmem:[%s1408_s29 + $0xf8] sm:$0xff] %v256_v31 }
  0x24 PF: > { %p1154_p8 = scmp.ge.s32.totalorder %s1332_s16, 1  ;;  %p270_p9 = scmp.lt.s32.totalorder %s1332_s16, 5 }
  0x26   : > { %p271_p10 = pnand %p1154_p8, %p270_p9 }
  0x27   : > { %s277_s30 = sand.u32 (!%p271_p10), 1, %s1316_s12   ;;  %s1157_s19 = sshll.u32 (!%p271_p10), %s1324_s14, 2 }
  0x28   : > { %274 = sbr.rel (%p271_p10) target bundleno = 313 (0x139), region = 51  ;;  %s1474_s4 = sshll.u32 (!%p271_p10), %s277_s30, 8 }
  0x29   : > { %s1479_s5 = scalar_lea.vmem (!%p271_p10), [#allocation3], %s1474_s4  ;;  %p323_p11 = scmp.lt.s32.totalorder (!%p271_p10), %s1157_s19, 15 }
  0x2a   : > { %s1546_s25 = scalar_lea.vmem (!%p271_p10), [#allocation4], %s1474_s4 }
  0x2d   : > { %v1334_v32 = vmov 0   ;;  %v1242_v33 = vld [vmem:[%s1479_s5 + $0xe4] ss:$16 sps:$4 sm:$0xff]   ;;  %v1244_v34 = vld [vmem:[%s1479_s5 + $0xec] ss:$16 sps:$4 sm:$0xff]   ;;  %v869_v5 = vlaneseq  ;;  %s1709_s19 = smov (!%p323_p11, %s1157_s19), 15 }
  0x2e   : > { %654 = vmatprep.mubr.bf16.mxu0 %v1334_v32  ;;  %727 = vmatprep.mubr.bf16.mxu1 %v1334_v32  ;;  %v1246_v35 = vld [vmem:[%s1479_s5 + $0xe0] ss:$16 sps:$4 sm:$0xff]   ;;  %v1247_v36 = vld [vmem:[%s1479_s5 + $0xe8] ss:$16 sps:$4 sm:$0xff]   ;;  %v1248_v37 = vld [vmem:[%s1479_s5 + $0xc4] ss:$16 sps:$4 sm:$0xff]   ;;  %s325_s24 = scalar_lea.vmem %s1699_s2, %s1709_s19 }
  0x2f   : > { %622 = vmatprep.subr.bf16.mxu0 %v1242_v33  ;;  %695 = vmatprep.subr.bf16.mxu1 %v1244_v34  ;;  %v1250_v38 = vld [vmem:[%s1479_s5 + $0xcc] ss:$16 sps:$4 sm:$0xff]   ;;  %v1252_v39 = vld [vmem:[%s1479_s5 + $0xc0] ss:$16 sps:$4 sm:$0xff]   ;;  %v1253_v40 = vld [vmem:[%s1479_s5 + $0xc8] ss:$16 sps:$4 sm:$0xff]  }
  0x30   : > { %623 = vmatpush1.bf16.msra.mxu0 %v1246_v35  ;;  %696 = vmatpush1.bf16.msra.mxu1 %v1247_v36  ;;  %v1254_v41 = vld [vmem:[%s1479_s5 + $0xa4] ss:$16 sps:$4 sm:$0xff]   ;;  %v1256_v42 = vld [vmem:[%s1479_s5 + $0xac] ss:$16 sps:$4 sm:$0xff]   ;;  %v1258_v43 = vld [vmem:[%s1479_s5 + $0xa0] ss:$16 sps:$4 sm:$0xff]  }
  0x31   : > { %624 = vmatprep.subr.bf16.mxu0 %v1248_v37  ;;  %697 = vmatprep.subr.bf16.mxu1 %v1250_v38  ;;  %v1259_v44 = vld [vmem:[%s1479_s5 + $0xa8] ss:$16 sps:$4 sm:$0xff]   ;;  %v1260_v45 = vld [vmem:[%s1479_s5 + $0x84] ss:$16 sps:$4 sm:$0xff]   ;;  %v1262_v46 = vld [vmem:[%s1479_s5 + $0x8c] ss:$16 sps:$4 sm:$0xff]  }
  0x32   : > { %v1264_v47 = vld [vmem:[%s1479_s5 + $0x80] ss:$16 sps:$4 sm:$0xff]   ;;  %v1265_v48 = vld [vmem:[%s1479_s5 + $0x88] ss:$16 sps:$4 sm:$0xff]   ;;  %v1266_v49 = vld [vmem:[%s1479_s5 + $0x64] ss:$16 sps:$4 sm:$0xff]  }
  0x33   : > { %v1268_v50 = vld [vmem:[%s1479_s5 + $0x6c] ss:$16 sps:$4 sm:$0xff]   ;;  %v1270_v51 = vld [vmem:[%s1479_s5 + $0x60] ss:$16 sps:$4 sm:$0xff]   ;;  %v1271_v52 = vld [vmem:[%s1479_s5 + $0x68] ss:$16 sps:$4 sm:$0xff]  }
  0x34   : > { %625 = vmatpush1.bf16.msra.mxu0 %v1252_v39  ;;  %698 = vmatpush1.bf16.msra.mxu1 %v1253_v40  ;;  %v1272_v53 = vld [vmem:[%s1479_s5 + $0x44] ss:$16 sps:$4 sm:$0xff]   ;;  %v1274_v54 = vld [vmem:[%s1479_s5 + $0x4c] ss:$16 sps:$4 sm:$0xff]   ;;  %v1276_v55 = vld [vmem:[%s1479_s5 + $0x40] ss:$16 sps:$4 sm:$0xff]  }
  0x35   : > { %626 = vmatprep.subr.bf16.mxu0 %v1254_v41  ;;  %699 = vmatprep.subr.bf16.mxu1 %v1256_v42  ;;  %v1277_v56 = vld [vmem:[%s1479_s5 + $0x48] ss:$16 sps:$4 sm:$0xff]   ;;  %v1278_v57 = vld [vmem:[%s1479_s5 + $0x24] ss:$16 sps:$4 sm:$0xff]   ;;  %v1280_v58 = vld [vmem:[%s1479_s5 + $0x2c] ss:$16 sps:$4 sm:$0xff]  }
  0x36   : > { %v1282_v59 = vld [vmem:[%s1479_s5 + $0x20] ss:$16 sps:$4 sm:$0xff]   ;;  %v1283_v60 = vld [vmem:[%s1479_s5 + $0x28] ss:$16 sps:$4 sm:$0xff]   ;;  %v1284_v61 = vld [vmem:[%s1479_s5 + $0x4] ss:$16 sps:$4 sm:$0xff]  }
  0x37   : > { %v1286_v62 = vld [vmem:[%s1479_s5 + $0xc] ss:$16 sps:$4 sm:$0xff]   ;;  %v1288_v63 = vld [vmem:[%s1479_s5] ss:$16 sps:$4 sm:$0xff]   ;;  %v1289_v0 = vld [vmem:[%s1479_s5 + $0x8] ss:$16 sps:$4 sm:$0xff]  }
  0x38   : > { %627 = vmatpush1.bf16.msra.mxu0 %v1258_v43  ;;  %700 = vmatpush1.bf16.msra.mxu1 %v1259_v44  ;;  %v1290_v1 = vld [vmem:[%s1697_s0] sm:$0xff]   ;;  %v1291_v2 = vld [vmem:[%s1697_s0 + $0x8] sm:$0xff]   ;;  %v1292_v3 = vld [vmem:[%s1697_s0 + $0x10] sm:$0xff]   ;;  %v870_v6 = vshrl.u32 %v869_v5, 7  ;;  %s1200_s26 = sshll.u32 (%p1390_p6), %s1324_s14, 5 }
  0x39   : > { %628 = vmatprep.subr.bf16.mxu0 %v1260_v45  ;;  %701 = vmatprep.subr.bf16.mxu1 %v1262_v46  ;;  %v1293_v4 = vld [vmem:[%s1697_s0 + $0x18] sm:$0xff]   ;;  %v867_v9 = vld [vmem:[%s325_s24] sm:$0xf]  ;;  %s1619_s29 = scalar_lea.vmem (%p1390_p6), %s1700_s3, %s1200_s26 }
  0x3a   : > { %v871_v7 = vsub.s32 0, %v870_v6  ;;  %v879_v8 = vsub.s32 2, %v870_v6  ;;  %v875_v10 = vsub.s32 1, %v870_v6  ;;  %v883_v11 = vsub.s32 3, %v870_v6 }
  0x3c   : > { %629 = vmatpush1.bf16.msra.mxu0 %v1264_v47  ;;  %702 = vmatpush1.bf16.msra.mxu1 %v1265_v48  ;;  %v1535_v12 = vrot.slane %v867_v9, %v871_v7  ;;  %v1537_v13 = vrot.slane %v867_v9, %v879_v8  ;;  %v1539_v14 = vrot.slane %v867_v9, %v875_v10 }
  0x3d   : > { %630 = vmatprep.subr.bf16.mxu0 %v1266_v49  ;;  %703 = vmatprep.subr.bf16.mxu1 %v1268_v50  ;;  %v1541_v15 = vrot.slane %v867_v9, %v883_v11 }
  0x40   : > { %631 = vmatpush1.bf16.msra.mxu0 %v1270_v51  ;;  %704 = vmatpush1.bf16.msra.mxu1 %v1271_v52 }
  0x41   : > { %632 = vmatprep.subr.bf16.mxu0 %v1272_v53  ;;  %705 = vmatprep.subr.bf16.mxu1 %v1274_v54 }
  0x44   : > { %633 = vmatpush1.bf16.msra.mxu0 %v1276_v55  ;;  %706 = vmatpush1.bf16.msra.mxu1 %v1277_v56 }
  0x45   : > { %634 = vmatprep.subr.bf16.mxu0 %v1278_v57  ;;  %707 = vmatprep.subr.bf16.mxu1 %v1280_v58 }
  0x48   : > { %635 = vmatpush1.bf16.msra.mxu0 %v1282_v59  ;;  %708 = vmatpush1.bf16.msra.mxu1 %v1283_v60 }
  0x49   : > { %636 = vmatprep.subr.bf16.mxu0 %v1284_v61  ;;  %709 = vmatprep.subr.bf16.mxu1 %v1286_v62 }
  0x4c   : > { %637 = vmatpush1.bf16.msra.mxu0 %v1288_v63  ;;  %710 = vmatpush1.bf16.msra.mxu1 %v1289_v0 }
  0x4f   : > { %655 = vmatmul.mubr.bf16.vlgmr.msra.gmra.mxu0 %v1290_v1  ;;  %728 = vmatmul.mubr.bf16.vlgmr.msra.gmra.mxu1 %v1290_v1 }
  0x50   : > { %664 = vmatprep.mubr.bf16.mxu0 %v1334_v32  ;;  %737 = vmatprep.mubr.bf16.mxu1 %v1334_v32 }
  0x57   : > { %665 = vmatmul.mubr.bf16.gmra.mxu0 %v1291_v2  ;;  %738 = vmatmul.mubr.bf16.gmra.mxu1 %v1291_v2 }
  0x58   : > { %674 = vmatprep.mubr.bf16.mxu0 %v1334_v32  ;;  %747 = vmatprep.mubr.bf16.mxu1 %v1334_v32 }
  0x5f   : > { %675 = vmatmul.mubr.bf16.gmra.mxu0 %v1292_v3  ;;  %748 = vmatmul.mubr.bf16.gmra.mxu1 %v1292_v3 }
  0x60   : > { %684 = vmatprep.mubr.bf16.mxu0 %v1334_v32  ;;  %757 = vmatprep.mubr.bf16.mxu1 %v1334_v32 }
  0x67   : > { %685 = vmatmul.mubr.bf16.gmra.mxu0 %v1293_v4  ;;  %758 = vmatmul.mubr.bf16.gmra.mxu1 %v1293_v4 }
 0x10f   : > { %v656_v16 = vpop.f32.mrf.mxu0  ;;  %v729_v17 = vpop.f32.mrf.mxu1 }
 0x110   : > { %v889_v18 = vadd.f32 %v1535_v12, %v656_v16  ;;  %v891_v19 = vadd.f32 %v1537_v13, %v729_v17 }
 0x111   : > { %v658_v20 = vpop.f32.mrf.mxu0  ;;  %v731_v21 = vpop.f32.mrf.mxu1 }
 0x112   : > { %921 = vst [vmem:[%s1546_s25] sm:$0xff] %v889_v18  ;;  %923 = vst [vmem:[%s1546_s25 + $0x10] sm:$0xff] %v891_v19  ;;  %v890_v22 = vadd.f32 %v1539_v14, %v658_v20  ;;  %v892_v23 = vadd.f32 %v1541_v15, %v731_v21 }
 0x113   : > { %v660_v24 = vpop.f32.mrf.mxu0  ;;  %v733_v25 = vpop.f32.mrf.mxu1 }
 0x114   : > { %922 = vst [vmem:[%s1546_s25 + $0x8] sm:$0xff] %v890_v22  ;;  %924 = vst [vmem:[%s1546_s25 + $0x18] sm:$0xff] %v892_v23  ;;  %v893_v26 = vadd.f32 %v1535_v12, %v660_v24  ;;  %v895_v27 = vadd.f32 %v1537_v13, %v733_v25 }
 0x115   : > { %v662_v28 = vpop.f32.mrf.mxu0  ;;  %v735_v29 = vpop.f32.mrf.mxu1 }
 0x116   : > { %925 = vst [vmem:[%s1546_s25 + $0x20] sm:$0xff] %v893_v26  ;;  %927 = vst [vmem:[%s1546_s25 + $0x30] sm:$0xff] %v895_v27  ;;  %v894_v30 = vadd.f32 %v1539_v14, %v662_v28  ;;  %v896_v31 = vadd.f32 %v1541_v15, %v735_v29 }
 0x117   : > { %v666_v32 = vpop.f32.mrf.mxu0  ;;  %v739_v33 = vpop.f32.mrf.mxu1 }
 0x118   : > { %926 = vst [vmem:[%s1546_s25 + $0x28] sm:$0xff] %v894_v30  ;;  %928 = vst [vmem:[%s1546_s25 + $0x38] sm:$0xff] %v896_v31  ;;  %v897_v34 = vadd.f32 %v1535_v12, %v666_v32  ;;  %v899_v35 = vadd.f32 %v1537_v13, %v739_v33 }
 0x119   : > { %v668_v36 = vpop.f32.mrf.mxu0  ;;  %v741_v37 = vpop.f32.mrf.mxu1 }
 0x11a   : > { %929 = vst [vmem:[%s1546_s25 + $0x40] sm:$0xff] %v897_v34  ;;  %931 = vst [vmem:[%s1546_s25 + $0x50] sm:$0xff] %v899_v35  ;;  %v898_v38 = vadd.f32 %v1539_v14, %v668_v36  ;;  %v900_v39 = vadd.f32 %v1541_v15, %v741_v37 }
 0x11b   : > { %v670_v40 = vpop.f32.mrf.mxu0  ;;  %v743_v41 = vpop.f32.mrf.mxu1 }
 0x11c   : > { %930 = vst [vmem:[%s1546_s25 + $0x48] sm:$0xff] %v898_v38  ;;  %932 = vst [vmem:[%s1546_s25 + $0x58] sm:$0xff] %v900_v39  ;;  %v901_v42 = vadd.f32 %v1535_v12, %v670_v40  ;;  %v903_v43 = vadd.f32 %v1537_v13, %v743_v41 }
 0x11d   : > { %v672_v44 = vpop.f32.mrf.mxu0  ;;  %v745_v45 = vpop.f32.mrf.mxu1  ;;  %v986_v20 = vld [vmem:[%s1546_s25 + $0x20] sm:$0xff] (%p1390_p6)  ;;  %v990_v22 = vld [vmem:[%s1546_s25 + $0x30] sm:$0xff] (%p1390_p6) }
 0x11e   : > { %933 = vst [vmem:[%s1546_s25 + $0x60] sm:$0xff] %v901_v42  ;;  %935 = vst [vmem:[%s1546_s25 + $0x70] sm:$0xff] %v903_v43  ;;  %v902_v46 = vadd.f32 %v1539_v14, %v672_v44  ;;  %v904_v47 = vadd.f32 %v1541_v15, %v745_v45 }
 0x11f   : > { %v676_v48 = vpop.f32.mrf.mxu0  ;;  %v749_v49 = vpop.f32.mrf.mxu1  ;;  %v988_v21 = vld [vmem:[%s1546_s25 + $0x28] sm:$0xff] (%p1390_p6)  ;;  %987 = vst [vmem:[%s1619_s29 + $0x80] sm:$0xff] (%p1390_p6), %v986_v20  ;;  %v992_v23 = vld [vmem:[%s1546_s25 + $0x38] sm:$0xff] (%p1390_p6)  ;;  %991 = vst [vmem:[%s1619_s29 + $0x90] sm:$0xff] (%p1390_p6), %v990_v22 }
 0x120   : > { %934 = vst [vmem:[%s1546_s25 + $0x68] sm:$0xff] %v902_v46  ;;  %936 = vst [vmem:[%s1546_s25 + $0x78] sm:$0xff] %v904_v47  ;;  %v905_v50 = vadd.f32 %v1535_v12, %v676_v48  ;;  %v907_v51 = vadd.f32 %v1537_v13, %v749_v49 }
 0x121   : > { %v678_v52 = vpop.f32.mrf.mxu0  ;;  %v751_v53 = vpop.f32.mrf.mxu1  ;;  %989 = vst [vmem:[%s1619_s29 + $0x88] sm:$0xff] (%p1390_p6), %v988_v21  ;;  %v994_v24 = vld [vmem:[%s1546_s25 + $0x40] sm:$0xff] (%p1390_p6)  ;;  %993 = vst [vmem:[%s1619_s29 + $0x98] sm:$0xff] (%p1390_p6), %v992_v23  ;;  %v998_v26 = vld [vmem:[%s1546_s25 + $0x50] sm:$0xff] (%p1390_p6) }
 0x122   : > { %937 = vst [vmem:[%s1546_s25 + $0x80] sm:$0xff] %v905_v50  ;;  %939 = vst [vmem:[%s1546_s25 + $0x90] sm:$0xff] %v907_v51  ;;  %v906_v54 = vadd.f32 %v1539_v14, %v678_v52  ;;  %v908_v55 = vadd.f32 %v1541_v15, %v751_v53 }
 0x123   : > { %v680_v56 = vpop.f32.mrf.mxu0  ;;  %v753_v57 = vpop.f32.mrf.mxu1  ;;  %995 = vst [vmem:[%s1619_s29 + $0x100] sm:$0xff] (%p1390_p6), %v994_v24  ;;  %v996_v25 = vld [vmem:[%s1546_s25 + $0x48] sm:$0xff] (%p1390_p6)  ;;  %v1000_v27 = vld [vmem:[%s1546_s25 + $0x58] sm:$0xff] (%p1390_p6)  ;;  %999 = vst [vmem:[%s1619_s29 + $0x110] sm:$0xff] (%p1390_p6), %v998_v26 }
 0x124   : > { %938 = vst [vmem:[%s1546_s25 + $0x88] sm:$0xff] %v906_v54  ;;  %940 = vst [vmem:[%s1546_s25 + $0x98] sm:$0xff] %v908_v55  ;;  %v909_v58 = vadd.f32 %v1535_v12, %v680_v56  ;;  %v911_v59 = vadd.f32 %v1537_v13, %v753_v57 }
 0x125   : > { %v682_v60 = vpop.f32.mrf.mxu0  ;;  %v755_v61 = vpop.f32.mrf.mxu1  ;;  %997 = vst [vmem:[%s1619_s29 + $0x108] sm:$0xff] (%p1390_p6), %v996_v25  ;;  %1001 = vst [vmem:[%s1619_s29 + $0x118] sm:$0xff] (%p1390_p6), %v1000_v27  ;;  %v1002_v28 = vld [vmem:[%s1546_s25 + $0x60] sm:$0xff] (%p1390_p6)  ;;  %v1006_v30 = vld [vmem:[%s1546_s25 + $0x70] sm:$0xff] (%p1390_p6) }
 0x126   : > { %941 = vst [vmem:[%s1546_s25 + $0xa0] sm:$0xff] %v909_v58  ;;  %943 = vst [vmem:[%s1546_s25 + $0xb0] sm:$0xff] %v911_v59  ;;  %v910_v62 = vadd.f32 %v1539_v14, %v682_v60  ;;  %v912_v63 = vadd.f32 %v1541_v15, %v755_v61 }
 0x127   : > { %v686_v0 = vpop.f32.mrf.mxu0  ;;  %v759_v1 = vpop.f32.mrf.mxu1  ;;  %v1004_v29 = vld [vmem:[%s1546_s25 + $0x68] sm:$0xff] (%p1390_p6)  ;;  %1003 = vst [vmem:[%s1619_s29 + $0x180] sm:$0xff] (%p1390_p6), %v1002_v28  ;;  %1007 = vst [vmem:[%s1619_s29 + $0x190] sm:$0xff] (%p1390_p6), %v1006_v30  ;;  %v1008_v31 = vld [vmem:[%s1546_s25 + $0x78] sm:$0xff] (%p1390_p6) }
 0x128   : > { %942 = vst [vmem:[%s1546_s25 + $0xa8] sm:$0xff] %v910_v62  ;;  %944 = vst [vmem:[%s1546_s25 + $0xb8] sm:$0xff] %v912_v63  ;;  %v913_v2 = vadd.f32 %v1535_v12, %v686_v0  ;;  %v915_v3 = vadd.f32 %v1537_v13, %v759_v1 }
 0x129   : > { %v688_v4 = vpop.f32.mrf.mxu0  ;;  %v761_v5 = vpop.f32.mrf.mxu1  ;;  %1005 = vst [vmem:[%s1619_s29 + $0x188] sm:$0xff] (%p1390_p6), %v1004_v29  ;;  %v1010_v32 = vld [vmem:[%s1546_s25 + $0x80] sm:$0xff] (%p1390_p6)  ;;  %1009 = vst [vmem:[%s1619_s29 + $0x198] sm:$0xff] (%p1390_p6), %v1008_v31  ;;  %v1014_v34 = vld [vmem:[%s1546_s25 + $0x90] sm:$0xff] (%p1390_p6) }
 0x12a   : > { %945 = vst [vmem:[%s1546_s25 + $0xc0] sm:$0xff] %v913_v2  ;;  %947 = vst [vmem:[%s1546_s25 + $0xd0] sm:$0xff] %v915_v3  ;;  %v914_v6 = vadd.f32 %v1539_v14, %v688_v4  ;;  %v916_v7 = vadd.f32 %v1541_v15, %v761_v5 }
 0x12b   : > { %v690_v8 = vpop.f32.mrf.mxu0  ;;  %v763_v9 = vpop.f32.mrf.mxu1  ;;  %v1012_v33 = vld [vmem:[%s1546_s25 + $0x88] sm:$0xff] (%p1390_p6)  ;;  %1011 = vst [vmem:[%s1619_s29 + $0x200] sm:$0xff] (%p1390_p6), %v1010_v32  ;;  %v1016_v35 = vld [vmem:[%s1546_s25 + $0x98] sm:$0xff] (%p1390_p6)  ;;  %1015 = vst [vmem:[%s1619_s29 + $0x210] sm:$0xff] (%p1390_p6), %v1014_v34 }
 0x12c   : > { %946 = vst [vmem:[%s1546_s25 + $0xc8] sm:$0xff] %v914_v6  ;;  %948 = vst [vmem:[%s1546_s25 + $0xd8] sm:$0xff] %v916_v7  ;;  %v917_v10 = vadd.f32 %v1535_v12, %v690_v8  ;;  %v919_v11 = vadd.f32 %v1537_v13, %v763_v9  ;;  %959 = sbr.rel (!%p1390_p6) target bundleno = 313 (0x139), region = 67  ;;  %v978_v12 = vld [vmem:[%s1546_s25] sm:$0xff] (%p1390_p6)  ;;  %v980_v13 = vld [vmem:[%s1546_s25 + $0x8] sm:$0xff] (%p1390_p6) }
 0x12d   : > { %v692_v16 = vpop.f32.mrf.mxu0  ;;  %v765_v17 = vpop.f32.mrf.mxu1  ;;  %979 = vst [vmem:[%s1619_s29] sm:$0xff] (%p1390_p6), %v978_v12  ;;  %981 = vst [vmem:[%s1619_s29 + $0x8] sm:$0xff] (%p1390_p6), %v980_v13  ;;  %v1018_v36 = vld [vmem:[%s1546_s25 + $0xa0] sm:$0xff] (%p1390_p6)  ;;  %v1022_v38 = vld [vmem:[%s1546_s25 + $0xb0] sm:$0xff] (%p1390_p6) }
 0x12e   : > { %949 = vst [vmem:[%s1546_s25 + $0xe0] sm:$0xff] %v917_v10  ;;  %951 = vst [vmem:[%s1546_s25 + $0xf0] sm:$0xff] %v919_v11  ;;  %v918_v18 = vadd.f32 %v1539_v14, %v692_v16  ;;  %v920_v19 = vadd.f32 %v1541_v15, %v765_v17  ;;  %v982_v14 = vld [vmem:[%s1546_s25 + $0x10] sm:$0xff] (%p1390_p6)  ;;  %v984_v15 = vld [vmem:[%s1546_s25 + $0x18] sm:$0xff] (%p1390_p6) }
 0x12f   : > { %983 = vst [vmem:[%s1619_s29 + $0x10] sm:$0xff] (%p1390_p6), %v982_v14  ;;  %985 = vst [vmem:[%s1619_s29 + $0x18] sm:$0xff] (%p1390_p6), %v984_v15  ;;  %v1020_v37 = vld [vmem:[%s1546_s25 + $0xa8] sm:$0xff] (%p1390_p6)  ;;  %v1024_v39 = vld [vmem:[%s1546_s25 + $0xb8] sm:$0xff] (%p1390_p6) }
 0x130   : > { %950 = vst [vmem:[%s1546_s25 + $0xe8] sm:$0xff] %v918_v18  ;;  %952 = vst [vmem:[%s1546_s25 + $0xf8] sm:$0xff] %v920_v19 }
 0x131   : > { %1013 = vst [vmem:[%s1619_s29 + $0x208] sm:$0xff] %v1012_v33  ;;  %1017 = vst [vmem:[%s1619_s29 + $0x218] sm:$0xff] %v1016_v35  ;;  %v1026_v40 = vld [vmem:[%s1546_s25 + $0xc0] sm:$0xff]  ;;  %v1030_v42 = vld [vmem:[%s1546_s25 + $0xd0] sm:$0xff] }
 0x132   : > { %1019 = vst [vmem:[%s1619_s29 + $0x280] sm:$0xff] %v1018_v36  ;;  %1021 = vst [vmem:[%s1619_s29 + $0x288] sm:$0xff] %v1020_v37 }
 0x133   : > { %1023 = vst [vmem:[%s1619_s29 + $0x290] sm:$0xff] %v1022_v38  ;;  %1025 = vst [vmem:[%s1619_s29 + $0x298] sm:$0xff] %v1024_v39  ;;  %v1028_v41 = vld [vmem:[%s1546_s25 + $0xc8] sm:$0xff]  ;;  %v1032_v43 = vld [vmem:[%s1546_s25 + $0xd8] sm:$0xff] }
 0x134   : > { %1027 = vst [vmem:[%s1619_s29 + $0x300] sm:$0xff] %v1026_v40  ;;  %1029 = vst [vmem:[%s1619_s29 + $0x308] sm:$0xff] %v1028_v41 }
 0x135   : > { %1031 = vst [vmem:[%s1619_s29 + $0x310] sm:$0xff] %v1030_v42  ;;  %v1034_v44 = vld [vmem:[%s1546_s25 + $0xe0] sm:$0xff]  ;;  %1033 = vst [vmem:[%s1619_s29 + $0x318] sm:$0xff] %v1032_v43  ;;  %v1038_v46 = vld [vmem:[%s1546_s25 + $0xf0] sm:$0xff] }
 0x136   : > { %1035 = vst [vmem:[%s1619_s29 + $0x380] sm:$0xff] %v1034_v44  ;;  %1039 = vst [vmem:[%s1619_s29 + $0x390] sm:$0xff] %v1038_v46 }
 0x137   : > { %v1036_v45 = vld [vmem:[%s1546_s25 + $0xe8] sm:$0xff]  ;;  %v1040_v47 = vld [vmem:[%s1546_s25 + $0xf8] sm:$0xff] }
 0x138   : > { %1037 = vst [vmem:[%s1619_s29 + $0x388] sm:$0xff] %v1036_v45  ;;  %1041 = vst [vmem:[%s1619_s29 + $0x398] sm:$0xff] %v1040_v47 }
 0x139 PF: > { %s13_s16 = sadd.s32 1, %s1332_s16   ;;  %s1702_s12 = smov %s1320_s13 }
 0x13a   : > { %p10_p12 = scmp.ge.s32.totalorder %s13_s16, 6   ;;  %s1703_s13 = smov %s1395_s22 }
 0x13b   : > { %s1704_s14 = smov %s1328_s15  ;;  %s1705_s15 = smov %s1707_s17 }
 0x13c   :  { %12 = sbr.rel (!%p10_p12) target bundleno = 3 (0x3), region = 127 }

// kernel: bmn_forward.15
= control target key start
LH: loop header
LB: loop body
LE: loop exit
PB: predicated region body
PF: predicated region fallthrough
CT: control target
= control target key end

     0   :  { %s1457_s12 = smov 0   ;;  %s1459_s13 = smov 0   ;;  %s1650_s0 = inlined_call_operand.vmem [shape: bf16[512,256], index: 0, kind: input, shape index: {}]   ;;  %s1651_s1 = inlined_call_operand.vmem [shape: bf16[256,128], index: 1, kind: input, shape index: {}]   ;;  %s1652_s2 = inlined_call_operand.vmem [shape: f32[1,128], index: 2, kind: input, shape index: {}]   ;;  %s1653_s3 = inlined_call_operand.vmem [shape: f32[512,128], index: 3, kind: output, shape index: {}]  }
   0x1   :  { %s1461_s14 = smov 0  }
   0x2 LB: > { %s32_s15 = sadd.s32 1, %s1431_s13  ;;  %p1139_p0 = scmp.ge.s32.totalorder %s1435_s14, 1  ;;  %s1435_s14 = sphi %s1461_s14, %s13_s14   ;;  %s1431_s13 = sphi %s1459_s13, %s1655_s13   ;;  %s1427_s12 = sphi %s1457_s12, %s1654_s12  }
   0x3   : > { %p34_p1 = scmp.ge.s32.totalorder %s32_s15, 2  ;;  %p191_p2 = scmp.lt.s32.totalorder %s1435_s14, 3 }
   0x5   : > { %s1657_s15 = smov (%p34_p1, %s32_s15), 0  ;;  %p192_p3 = pnand %p1139_p0, %p191_p2 }
   0x6   : > { %s1140_s18 = sshll.u32 (!%p192_p3), %s1427_s12, 5 }
   0x7   : > { %195 = sbr.rel (%p192_p3) target bundleno = 307 (0x133), region = 32  ;;  %p236_p4 = scmp.lt.s32.totalorder (!%p192_p3), %s1140_s18, 63 }
   0xc   : > { %v1349_v0 = vld [vmem:[%s1651_s1 + $0x78] sm:$0xff]   ;;  %v1351_v2 = vld [vmem:[%s1651_s1 + $0x70] sm:$0xff]   ;;  %v1353_v4 = vld [vmem:[%s1651_s1 + $0x68] sm:$0xff]   ;;  %s1659_s18 = smov (!%p236_p4, %s1140_s18), 63 }
   0xd   : > { %v1350_v1 = vld [vmem:[%s1651_s1 + $0x38] sm:$0xff]   ;;  %1197 = vmatprep.subr.bf16.mxu0 %v1349_v0  ;;  %1309 = vmatprep.subr.bf16.mxu1 %v1349_v0  ;;  %v1352_v3 = vld [vmem:[%s1651_s1 + $0x30] sm:$0xff]   ;;  %v1354_v5 = vld [vmem:[%s1651_s1 + $0x28] sm:$0xff]   ;;  %s1196_s6 = sshll.u32 %s1659_s18, 3 }
   0xe   : > { %1198 = vmatpush3.bf16.msra.mxu0 %v1350_v1  ;;  %1317 = vmatpush3.bf16.msra.mxu1 %v1350_v1  ;;  %v1355_v6 = vld [vmem:[%s1651_s1 + $0x60] sm:$0xff]   ;;  %v1357_v8 = vld [vmem:[%s1651_s1 + $0x58] sm:$0xff]   ;;  %s1510_s11 = scalar_lea.vmem %s1650_s0, %s1196_s6  ;;  %v1359_v10 = vld [vmem:[%s1651_s1 + $0x50] sm:$0xff]   ;;  %s1577_s8 = scalar_lea.vmem %s1653_s3, %s1196_s6 }
   0xf   : > { %1199 = vmatprep.subr.bf16.mxu0 %v1351_v2  ;;  %1310 = vmatprep.subr.bf16.mxu1 %v1351_v2  ;;  %v1356_v7 = vld [vmem:[%s1651_s1 + $0x20] sm:$0xff]   ;;  %v1358_v9 = vld [vmem:[%s1651_s1 + $0x18] sm:$0xff]   ;;  %v1360_v13 = vld [vmem:[%s1651_s1 + $0x10] sm:$0xff]  }
  0x10   : > { %v1367_v11 = vld [vmem:[%s1510_s11 + $0x4] ss:$8 sps:$4 sm:$0xff]   ;;  %v1365_v18 = vld [vmem:[%s1510_s11] ss:$8 sps:$4 sm:$0xff]   ;;  %v1371_v20 = vld [vmem:[%s1510_s11 + $0x14] ss:$8 sps:$4 sm:$0xff]  }
  0x11   : > { %v1370_v12 = vld [vmem:[%s1510_s11 + $0x84] ss:$8 sps:$4 sm:$0xff]   ;;  %688 = vmatprep.mubr.bf16.mxu0 %v1367_v11  ;;  %v1368_v19 = vld [vmem:[%s1510_s11 + $0x80] ss:$8 sps:$4 sm:$0xff]   ;;  %v1373_v21 = vld [vmem:[%s1510_s11 + $0x94] ss:$8 sps:$4 sm:$0xff]  }
  0x12   : > { %1200 = vmatpush3.bf16.msra.mxu0 %v1352_v3  ;;  %1318 = vmatpush3.bf16.msra.mxu1 %v1352_v3  ;;  %v1361_v14 = vld [vmem:[%s1651_s1 + $0x48] sm:$0xff]   ;;  %v1363_v16 = vld [vmem:[%s1651_s1 + $0x40] sm:$0xff]   ;;  %v1375_v22 = vld [vmem:[%s1510_s11 + $0x10] ss:$8 sps:$4 sm:$0xff]  }
  0x13   : > { %1201 = vmatprep.subr.bf16.mxu0 %v1353_v4  ;;  %1311 = vmatprep.subr.bf16.mxu1 %v1353_v4  ;;  %v1362_v15 = vld [vmem:[%s1651_s1 + $0x8] sm:$0xff]   ;;  %v1364_v17 = vld [vmem:[%s1651_s1] sm:$0xff]   ;;  %v1376_v23 = vld [vmem:[%s1510_s11 + $0x90] ss:$8 sps:$4 sm:$0xff]  }
  0x14   : > { %752 = vmatprep.mubr.bf16.mxu1 %v1370_v12  ;;  %v1377_v24 = vld [vmem:[%s1510_s11 + $0x24] ss:$8 sps:$4 sm:$0xff]   ;;  %v1381_v26 = vld [vmem:[%s1510_s11 + $0x20] ss:$8 sps:$4 sm:$0xff]   ;;  %v1383_v28 = vld [vmem:[%s1510_s11 + $0x34] ss:$8 sps:$4 sm:$0xff]  }
  0x15   : > { %v1379_v25 = vld [vmem:[%s1510_s11 + $0xa4] ss:$8 sps:$4 sm:$0xff]   ;;  %v1382_v27 = vld [vmem:[%s1510_s11 + $0xa0] ss:$8 sps:$4 sm:$0xff]   ;;  %v1385_v29 = vld [vmem:[%s1510_s11 + $0xb4] ss:$8 sps:$4 sm:$0xff]  }
  0x16   : > { %1202 = vmatpush3.bf16.msra.mxu0 %v1354_v5  ;;  %1319 = vmatpush3.bf16.msra.mxu1 %v1354_v5  ;;  %v1387_v30 = vld [vmem:[%s1510_s11 + $0x30] ss:$8 sps:$4 sm:$0xff]   ;;  %v1389_v32 = vld [vmem:[%s1510_s11 + $0x44] ss:$8 sps:$4 sm:$0xff]   ;;  %v1393_v34 = vld [vmem:[%s1510_s11 + $0x40] ss:$8 sps:$4 sm:$0xff]  }
  0x17   : > { %1203 = vmatprep.subr.bf16.mxu0 %v1355_v6  ;;  %1312 = vmatprep.subr.bf16.mxu1 %v1355_v6  ;;  %v1388_v31 = vld [vmem:[%s1510_s11 + $0xb0] ss:$8 sps:$4 sm:$0xff]   ;;  %v1391_v33 = vld [vmem:[%s1510_s11 + $0xc4] ss:$8 sps:$4 sm:$0xff]   ;;  %v1394_v35 = vld [vmem:[%s1510_s11 + $0xc0] ss:$8 sps:$4 sm:$0xff]  }
  0x18   : > { %v1395_v36 = vld [vmem:[%s1510_s11 + $0x54] ss:$8 sps:$4 sm:$0xff]   ;;  %v1399_v38 = vld [vmem:[%s1510_s11 + $0x50] ss:$8 sps:$4 sm:$0xff]   ;;  %v1401_v40 = vld [vmem:[%s1510_s11 + $0x64] ss:$8 sps:$4 sm:$0xff]  }
  0x19   : > { %v1397_v37 = vld [vmem:[%s1510_s11 + $0xd4] ss:$8 sps:$4 sm:$0xff]   ;;  %v1400_v39 = vld [vmem:[%s1510_s11 + $0xd0] ss:$8 sps:$4 sm:$0xff]   ;;  %v1403_v41 = vld [vmem:[%s1510_s11 + $0xe4] ss:$8 sps:$4 sm:$0xff]  }
  0x1a   : > { %1204 = vmatpush3.bf16.msra.mxu0 %v1356_v7  ;;  %1320 = vmatpush3.bf16.msra.mxu1 %v1356_v7  ;;  %v1405_v42 = vld [vmem:[%s1510_s11 + $0x60] ss:$8 sps:$4 sm:$0xff]   ;;  %v1407_v44 = vld [vmem:[%s1510_s11 + $0x74] ss:$8 sps:$4 sm:$0xff]   ;;  %v1411_v46 = vld [vmem:[%s1510_s11 + $0x70] ss:$8 sps:$4 sm:$0xff]  }
  0x1b   : > { %1205 = vmatprep.subr.bf16.mxu0 %v1357_v8  ;;  %1313 = vmatprep.subr.bf16.mxu1 %v1357_v8  ;;  %v1406_v43 = vld [vmem:[%s1510_s11 + $0xe0] ss:$8 sps:$4 sm:$0xff]   ;;  %v1409_v45 = vld [vmem:[%s1510_s11 + $0xf4] ss:$8 sps:$4 sm:$0xff]   ;;  %v1412_v47 = vld [vmem:[%s1510_s11 + $0xf0] ss:$8 sps:$4 sm:$0xff]  }
  0x1c   : > { %v1568_v51 = vld [vmem:[%s1652_s2] ss:$0 sm:$0xff] }
  0x1e   : > { %1206 = vmatpush3.bf16.msra.mxu0 %v1358_v9  ;;  %1321 = vmatpush3.bf16.msra.mxu1 %v1358_v9 }
  0x1f   : > { %1207 = vmatprep.subr.bf16.mxu0 %v1359_v10  ;;  %1314 = vmatprep.subr.bf16.mxu1 %v1359_v10 }
  0x22   : > { %1208 = vmatpush3.bf16.msra.mxu0 %v1360_v13  ;;  %1322 = vmatpush3.bf16.msra.mxu1 %v1360_v13 }
  0x23   : > { %1209 = vmatprep.subr.bf16.mxu0 %v1361_v14  ;;  %1315 = vmatprep.subr.bf16.mxu1 %v1361_v14 }
  0x26   : > { %1210 = vmatpush3.bf16.msra.mxu0 %v1362_v15  ;;  %1323 = vmatpush3.bf16.msra.mxu1 %v1362_v15 }
  0x27   : > { %1211 = vmatprep.subr.bf16.mxu0 %v1363_v16  ;;  %1316 = vmatprep.subr.bf16.mxu1 %v1363_v16 }
  0x2a   : > { %1212 = vmatpush3.bf16.msra.mxu0 %v1364_v17  ;;  %1324 = vmatpush3.bf16.msra.mxu1 %v1364_v17 }
  0x2d   : > { %689 = vmatmul.mubr.bf16.vlgmr.msra.gmra.mxu0 %v1365_v18  ;;  %753 = vmatmul.mubr.bf16.vlgmr.msra.gmra.mxu1 %v1368_v19 }
  0x2e   : > { %696 = vmatprep.mubr.bf16.mxu0 %v1371_v20  ;;  %760 = vmatprep.mubr.bf16.mxu1 %v1373_v21 }
  0x35   : > { %697 = vmatmul.mubr.bf16.gmra.mxu0 %v1375_v22  ;;  %761 = vmatmul.mubr.bf16.gmra.mxu1 %v1376_v23 }
  0x36   : > { %704 = vmatprep.mubr.bf16.mxu0 %v1377_v24  ;;  %768 = vmatprep.mubr.bf16.mxu1 %v1379_v25 }
  0x3d   : > { %705 = vmatmul.mubr.bf16.gmra.mxu0 %v1381_v26  ;;  %769 = vmatmul.mubr.bf16.gmra.mxu1 %v1382_v27 }
  0x3e   : > { %712 = vmatprep.mubr.bf16.mxu0 %v1383_v28  ;;  %776 = vmatprep.mubr.bf16.mxu1 %v1385_v29 }
  0x45   : > { %713 = vmatmul.mubr.bf16.gmra.mxu0 %v1387_v30  ;;  %777 = vmatmul.mubr.bf16.gmra.mxu1 %v1388_v31 }
  0x46   : > { %720 = vmatprep.mubr.bf16.mxu0 %v1389_v32  ;;  %784 = vmatprep.mubr.bf16.mxu1 %v1391_v33 }
  0x4d   : > { %721 = vmatmul.mubr.bf16.gmra.mxu0 %v1393_v34  ;;  %785 = vmatmul.mubr.bf16.gmra.mxu1 %v1394_v35 }
  0x4e   : > { %728 = vmatprep.mubr.bf16.mxu0 %v1395_v36  ;;  %792 = vmatprep.mubr.bf16.mxu1 %v1397_v37 }
  0x55   : > { %729 = vmatmul.mubr.bf16.gmra.mxu0 %v1399_v38  ;;  %793 = vmatmul.mubr.bf16.gmra.mxu1 %v1400_v39 }
  0x56   : > { %736 = vmatprep.mubr.bf16.mxu0 %v1401_v40  ;;  %800 = vmatprep.mubr.bf16.mxu1 %v1403_v41 }
  0x5d   : > { %737 = vmatmul.mubr.bf16.gmra.mxu0 %v1405_v42  ;;  %801 = vmatmul.mubr.bf16.gmra.mxu1 %v1406_v43 }
  0x5e   : > { %744 = vmatprep.mubr.bf16.mxu0 %v1407_v44  ;;  %808 = vmatprep.mubr.bf16.mxu1 %v1409_v45 }
  0x65   : > { %745 = vmatmul.mubr.bf16.gmra.mxu0 %v1411_v46  ;;  %809 = vmatmul.mubr.bf16.gmra.mxu1 %v1412_v47 }
  0xed   : > { %v1213_v48 = vpop.f32.mrf.mxu0  ;;  %v1261_v49 = vpop.f32.mrf.mxu1 }
  0xef   : > { %v1214_v50 = vpop.f32.mrf.mxu0  ;;  %v1262_v52 = vpop.f32.mrf.mxu1 }
  0xf0   : > { %v1215_v53 = vadd.f32 %v1214_v50, %v1213_v48  ;;  %v1263_v54 = vadd.f32 %v1262_v52, %v1261_v49 }
  0xf1   : > { %v1216_v55 = vpop.f32.mrf.mxu0  ;;  %v1264_v56 = vpop.f32.mrf.mxu1 }
  0xf2   : > { %v923_v57 = vadd.f32 %v1215_v53, %v1568_v51  ;;  %v939_v58 = vadd.f32 %v1263_v54, %v1568_v51 }
  0xf3   : > { %v1217_v59 = vpop.f32.mrf.mxu0  ;;  %v1265_v60 = vpop.f32.mrf.mxu1 }
  0xf4   : > { %v955_v61 = vmax.f32 %v923_v57, 0.0  ;;  %v971_v62 = vmax.f32 %v939_v58, 0.0  ;;  %v1218_v63 = vadd.f32 %v1217_v59, %v1216_v55  ;;  %v1266_v0 = vadd.f32 %v1265_v60, %v1264_v56 }
  0xf5   : > { %v1219_v1 = vpop.f32.mrf.mxu0  ;;  %v1267_v2 = vpop.f32.mrf.mxu1 }
  0xf6   : > { %987 = vst [vmem:[%s1577_s8] sm:$0xff] %v955_v61  ;;  %1003 = vst [vmem:[%s1577_s8 + $0x80] sm:$0xff] %v971_v62  ;;  %v924_v3 = vadd.f32 %v1218_v63, %v1568_v51  ;;  %v940_v4 = vadd.f32 %v1266_v0, %v1568_v51 }
  0xf7   : > { %v1220_v5 = vpop.f32.mrf.mxu0  ;;  %v1268_v6 = vpop.f32.mrf.mxu1 }
  0xf8   : > { %v956_v7 = vmax.f32 %v924_v3, 0.0  ;;  %v972_v8 = vmax.f32 %v940_v4, 0.0  ;;  %v1221_v9 = vadd.f32 %v1220_v5, %v1219_v1  ;;  %v1269_v10 = vadd.f32 %v1268_v6, %v1267_v2 }
  0xf9   : > { %v1222_v11 = vpop.f32.mrf.mxu0  ;;  %v1270_v12 = vpop.f32.mrf.mxu1 }
  0xfa   : > { %988 = vst [vmem:[%s1577_s8 + $0x8] sm:$0xff] %v956_v7  ;;  %1004 = vst [vmem:[%s1577_s8 + $0x88] sm:$0xff] %v972_v8  ;;  %v925_v13 = vadd.f32 %v1221_v9, %v1568_v51  ;;  %v941_v14 = vadd.f32 %v1269_v10, %v1568_v51 }
  0xfb   : > { %v1223_v15 = vpop.f32.mrf.mxu0  ;;  %v1271_v16 = vpop.f32.mrf.mxu1 }
  0xfc   : > { %v957_v17 = vmax.f32 %v925_v13, 0.0  ;;  %v973_v18 = vmax.f32 %v941_v14, 0.0  ;;  %v1224_v19 = vadd.f32 %v1223_v15, %v1222_v11  ;;  %v1272_v20 = vadd.f32 %v1271_v16, %v1270_v12 }
  0xfd   : > { %v1225_v21 = vpop.f32.mrf.mxu0  ;;  %v1273_v22 = vpop.f32.mrf.mxu1 }
  0xfe   : > { %989 = vst [vmem:[%s1577_s8 + $0x10] sm:$0xff] %v957_v17  ;;  %1005 = vst [vmem:[%s1577_s8 + $0x90] sm:$0xff] %v973_v18  ;;  %v926_v23 = vadd.f32 %v1224_v19, %v1568_v51  ;;  %v942_v24 = vadd.f32 %v1272_v20, %v1568_v51 }
  0xff   : > { %v1226_v25 = vpop.f32.mrf.mxu0  ;;  %v1274_v26 = vpop.f32.mrf.mxu1 }
 0x100   : > { %v958_v27 = vmax.f32 %v926_v23, 0.0  ;;  %v974_v28 = vmax.f32 %v942_v24, 0.0  ;;  %v1227_v29 = vadd.f32 %v1226_v25, %v1225_v21  ;;  %v1275_v30 = vadd.f32 %v1274_v26, %v1273_v22 }
 0x101   : > { %v1228_v31 = vpop.f32.mrf.mxu0  ;;  %v1276_v32 = vpop.f32.mrf.mxu1 }
 0x102   : > { %990 = vst [vmem:[%s1577_s8 + $0x18] sm:$0xff] %v958_v27  ;;  %1006 = vst [vmem:[%s1577_s8 + $0x98] sm:$0xff] %v974_v28  ;;  %v927_v33 = vadd.f32 %v1227_v29, %v1568_v51  ;;  %v943_v34 = vadd.f32 %v1275_v30, %v1568_v51 }
 0x103   : > { %v1229_v35 = vpop.f32.mrf.mxu0  ;;  %v1277_v36 = vpop.f32.mrf.mxu1 }
 0x104   : > { %v959_v37 = vmax.f32 %v927_v33, 0.0  ;;  %v975_v38 = vmax.f32 %v943_v34, 0.0  ;;  %v1230_v39 = vadd.f32 %v1229_v35, %v1228_v31  ;;  %v1278_v40 = vadd.f32 %v1277_v36, %v1276_v32 }
 0x105   : > { %v1231_v41 = vpop.f32.mrf.mxu0  ;;  %v1279_v42 = vpop.f32.mrf.mxu1 }
 0x106   : > { %991 = vst [vmem:[%s1577_s8 + $0x20] sm:$0xff] %v959_v37  ;;  %1007 = vst [vmem:[%s1577_s8 + $0xa0] sm:$0xff] %v975_v38  ;;  %v928_v43 = vadd.f32 %v1230_v39, %v1568_v51  ;;  %v944_v44 = vadd.f32 %v1278_v40, %v1568_v51 }
 0x107   : > { %v1232_v45 = vpop.f32.mrf.mxu0  ;;  %v1280_v46 = vpop.f32.mrf.mxu1 }
 0x108   : > { %v960_v47 = vmax.f32 %v928_v43, 0.0  ;;  %v976_v48 = vmax.f32 %v944_v44, 0.0  ;;  %v1233_v49 = vadd.f32 %v1232_v45, %v1231_v41  ;;  %v1281_v50 = vadd.f32 %v1280_v46, %v1279_v42 }
 0x109   : > { %v1234_v52 = vpop.f32.mrf.mxu0  ;;  %v1282_v53 = vpop.f32.mrf.mxu1 }
 0x10a   : > { %992 = vst [vmem:[%s1577_s8 + $0x28] sm:$0xff] %v960_v47  ;;  %1008 = vst [vmem:[%s1577_s8 + $0xa8] sm:$0xff] %v976_v48  ;;  %v929_v54 = vadd.f32 %v1233_v49, %v1568_v51  ;;  %v945_v55 = vadd.f32 %v1281_v50, %v1568_v51 }
 0x10b   : > { %v1235_v56 = vpop.f32.mrf.mxu0  ;;  %v1283_v57 = vpop.f32.mrf.mxu1 }
 0x10c   : > { %v961_v58 = vmax.f32 %v929_v54, 0.0  ;;  %v977_v59 = vmax.f32 %v945_v55, 0.0  ;;  %v1236_v60 = vadd.f32 %v1235_v56, %v1234_v52  ;;  %v1284_v61 = vadd.f32 %v1283_v57, %v1282_v53 }
 0x10d   : > { %v1237_v62 = vpop.f32.mrf.mxu0  ;;  %v1285_v63 = vpop.f32.mrf.mxu1 }
 0x10e   : > { %993 = vst [vmem:[%s1577_s8 + $0x30] sm:$0xff] %v961_v58  ;;  %1009 = vst [vmem:[%s1577_s8 + $0xb0] sm:$0xff] %v977_v59  ;;  %v930_v0 = vadd.f32 %v1236_v60, %v1568_v51  ;;  %v946_v1 = vadd.f32 %v1284_v61, %v1568_v51 }
 0x10f   : > { %v1238_v2 = vpop.f32.mrf.mxu0  ;;  %v1286_v3 = vpop.f32.mrf.mxu1 }
 0x110   : > { %v962_v4 = vmax.f32 %v930_v0, 0.0  ;;  %v978_v5 = vmax.f32 %v946_v1, 0.0  ;;  %v1239_v6 = vadd.f32 %v1238_v2, %v1237_v62  ;;  %v1287_v7 = vadd.f32 %v1286_v3, %v1285_v63 }
 0x111   : > { %v1240_v8 = vpop.f32.mrf.mxu0  ;;  %v1288_v9 = vpop.f32.mrf.mxu1 }
 0x112   : > { %994 = vst [vmem:[%s1577_s8 + $0x38] sm:$0xff] %v962_v4  ;;  %1010 = vst [vmem:[%s1577_s8 + $0xb8] sm:$0xff] %v978_v5  ;;  %v931_v10 = vadd.f32 %v1239_v6, %v1568_v51  ;;  %v947_v11 = vadd.f32 %v1287_v7, %v1568_v51 }
 0x113   : > { %v1241_v12 = vpop.f32.mrf.mxu0  ;;  %v1289_v13 = vpop.f32.mrf.mxu1 }
 0x114   : > { %v963_v14 = vmax.f32 %v931_v10, 0.0  ;;  %v979_v15 = vmax.f32 %v947_v11, 0.0  ;;  %v1242_v16 = vadd.f32 %v1241_v12, %v1240_v8  ;;  %v1290_v17 = vadd.f32 %v1289_v13, %v1288_v9 }
 0x115   : > { %v1243_v18 = vpop.f32.mrf.mxu0  ;;  %v1291_v19 = vpop.f32.mrf.mxu1 }
 0x116   : > { %995 = vst [vmem:[%s1577_s8 + $0x40] sm:$0xff] %v963_v14  ;;  %1011 = vst [vmem:[%s1577_s8 + $0xc0] sm:$0xff] %v979_v15  ;;  %v932_v20 = vadd.f32 %v1242_v16, %v1568_v51  ;;  %v948_v21 = vadd.f32 %v1290_v17, %v1568_v51 }
 0x117   : > { %v1244_v22 = vpop.f32.mrf.mxu0  ;;  %v1292_v23 = vpop.f32.mrf.mxu1 }
 0x118   : > { %v964_v24 = vmax.f32 %v932_v20, 0.0  ;;  %v980_v25 = vmax.f32 %v948_v21, 0.0  ;;  %v1245_v26 = vadd.f32 %v1244_v22, %v1243_v18  ;;  %v1293_v27 = vadd.f32 %v1292_v23, %v1291_v19 }
 0x119   : > { %v1246_v28 = vpop.f32.mrf.mxu0  ;;  %v1294_v29 = vpop.f32.mrf.mxu1 }
 0x11a   : > { %996 = vst [vmem:[%s1577_s8 + $0x48] sm:$0xff] %v964_v24  ;;  %1012 = vst [vmem:[%s1577_s8 + $0xc8] sm:$0xff] %v980_v25  ;;  %v933_v30 = vadd.f32 %v1245_v26, %v1568_v51  ;;  %v949_v31 = vadd.f32 %v1293_v27, %v1568_v51 }
 0x11b   : > { %v1247_v32 = vpop.f32.mrf.mxu0  ;;  %v1295_v33 = vpop.f32.mrf.mxu1 }
 0x11c   : > { %v965_v34 = vmax.f32 %v933_v30, 0.0  ;;  %v981_v35 = vmax.f32 %v949_v31, 0.0  ;;  %v1248_v36 = vadd.f32 %v1247_v32, %v1246_v28  ;;  %v1296_v37 = vadd.f32 %v1295_v33, %v1294_v29 }
 0x11d   : > { %v1249_v38 = vpop.f32.mrf.mxu0  ;;  %v1297_v39 = vpop.f32.mrf.mxu1 }
 0x11e   : > { %997 = vst [vmem:[%s1577_s8 + $0x50] sm:$0xff] %v965_v34  ;;  %1013 = vst [vmem:[%s1577_s8 + $0xd0] sm:$0xff] %v981_v35  ;;  %v934_v40 = vadd.f32 %v1248_v36, %v1568_v51  ;;  %v950_v41 = vadd.f32 %v1296_v37, %v1568_v51 }
 0x11f   : > { %v1250_v42 = vpop.f32.mrf.mxu0  ;;  %v1298_v43 = vpop.f32.mrf.mxu1 }
 0x120   : > { %v966_v44 = vmax.f32 %v934_v40, 0.0  ;;  %v982_v45 = vmax.f32 %v950_v41, 0.0  ;;  %v1251_v46 = vadd.f32 %v1250_v42, %v1249_v38  ;;  %v1299_v47 = vadd.f32 %v1298_v43, %v1297_v39 }
 0x121   : > { %v1252_v48 = vpop.f32.mrf.mxu0  ;;  %v1300_v49 = vpop.f32.mrf.mxu1 }
 0x122   : > { %998 = vst [vmem:[%s1577_s8 + $0x58] sm:$0xff] %v966_v44  ;;  %1014 = vst [vmem:[%s1577_s8 + $0xd8] sm:$0xff] %v982_v45  ;;  %v935_v50 = vadd.f32 %v1251_v46, %v1568_v51  ;;  %v951_v52 = vadd.f32 %v1299_v47, %v1568_v51 }
 0x123   : > { %v1253_v53 = vpop.f32.mrf.mxu0  ;;  %v1301_v54 = vpop.f32.mrf.mxu1 }
 0x124   : > { %v967_v55 = vmax.f32 %v935_v50, 0.0  ;;  %v983_v56 = vmax.f32 %v951_v52, 0.0  ;;  %v1254_v57 = vadd.f32 %v1253_v53, %v1252_v48  ;;  %v1302_v58 = vadd.f32 %v1301_v54, %v1300_v49 }
 0x125   : > { %v1255_v59 = vpop.f32.mrf.mxu0  ;;  %v1303_v60 = vpop.f32.mrf.mxu1 }
 0x126   : > { %999 = vst [vmem:[%s1577_s8 + $0x60] sm:$0xff] %v967_v55  ;;  %1015 = vst [vmem:[%s1577_s8 + $0xe0] sm:$0xff] %v983_v56  ;;  %v936_v61 = vadd.f32 %v1254_v57, %v1568_v51  ;;  %v952_v62 = vadd.f32 %v1302_v58, %v1568_v51 }
 0x127   : > { %v1256_v63 = vpop.f32.mrf.mxu0  ;;  %v1304_v0 = vpop.f32.mrf.mxu1 }
 0x128   : > { %v968_v1 = vmax.f32 %v936_v61, 0.0  ;;  %v984_v2 = vmax.f32 %v952_v62, 0.0  ;;  %v1257_v3 = vadd.f32 %v1256_v63, %v1255_v59  ;;  %v1305_v4 = vadd.f32 %v1304_v0, %v1303_v60 }
 0x129   : > { %v1258_v5 = vpop.f32.mrf.mxu0  ;;  %v1306_v6 = vpop.f32.mrf.mxu1 }
 0x12a   : > { %1000 = vst [vmem:[%s1577_s8 + $0x68] sm:$0xff] %v968_v1  ;;  %1016 = vst [vmem:[%s1577_s8 + $0xe8] sm:$0xff] %v984_v2  ;;  %v937_v7 = vadd.f32 %v1257_v3, %v1568_v51  ;;  %v953_v8 = vadd.f32 %v1305_v4, %v1568_v51 }
 0x12b   : > { %v1259_v9 = vpop.f32.mrf.mxu0  ;;  %v1307_v10 = vpop.f32.mrf.mxu1 }
 0x12c   : > { %v969_v11 = vmax.f32 %v937_v7, 0.0  ;;  %v985_v12 = vmax.f32 %v953_v8, 0.0  ;;  %v1260_v13 = vadd.f32 %v1259_v9, %v1258_v5  ;;  %v1308_v14 = vadd.f32 %v1307_v10, %v1306_v6 }
 0x12e   : > { %1001 = vst [vmem:[%s1577_s8 + $0x70] sm:$0xff] %v969_v11  ;;  %1017 = vst [vmem:[%s1577_s8 + $0xf0] sm:$0xff] %v985_v12  ;;  %v938_v15 = vadd.f32 %v1260_v13, %v1568_v51  ;;  %v954_v16 = vadd.f32 %v1308_v14, %v1568_v51 }
 0x130   : > { %v970_v17 = vmax.f32 %v938_v15, 0.0  ;;  %v986_v18 = vmax.f32 %v954_v16, 0.0 }
 0x132   : > { %1002 = vst [vmem:[%s1577_s8 + $0x78] sm:$0xff] %v970_v17  ;;  %1018 = vst [vmem:[%s1577_s8 + $0xf8] sm:$0xff] %v986_v18 }
 0x133 PF: > { %s13_s14 = sadd.s32 1, %s1435_s14   ;;  %s1654_s12 = smov %s1431_s13 }
 0x134   : > { %p10_p5 = scmp.ge.s32.totalorder %s13_s14, 4   ;;  %s1655_s13 = smov %s1657_s15 }
 0x136   :  { %12 = sbr.rel (!%p10_p5) target bundleno = 2 (0x2), region = 76 }

// kernel: bmn_forward.16
= control target key start
LH: loop header
LB: loop body
LE: loop exit
PB: predicated region body
PF: predicated region fallthrough
CT: control target
= control target key end

     0   :  { %s1212_s12 = smov 0   ;;  %s1214_s13 = smov 0   ;;  %s1362_s0 = inlined_call_operand.vmem [shape: bf16[512,128], index: 0, kind: input, shape index: {}]   ;;  %s1363_s1 = inlined_call_operand.vmem [shape: bf16[128,128], index: 1, kind: input, shape index: {}]   ;;  %s1364_s2 = inlined_call_operand.vmem [shape: f32[1,128], index: 2, kind: input, shape index: {}]   ;;  %s1365_s3 = inlined_call_operand.vmem [shape: f32[512,128], index: 3, kind: output, shape index: {}]  }
   0x1   :  { %s1216_s14 = smov 0  }
   0x2 LB: > { %s32_s15 = sadd.s32 1, %s1186_s13  ;;  %p1000_p0 = scmp.ge.s32.totalorder %s1190_s14, 1  ;;  %s1190_s14 = sphi %s1216_s14, %s13_s14   ;;  %s1186_s13 = sphi %s1214_s13, %s1367_s13   ;;  %s1182_s12 = sphi %s1212_s12, %s1366_s12  }
   0x3   : > { %p34_p1 = scmp.ge.s32.totalorder %s32_s15, 2  ;;  %p188_p2 = scmp.lt.s32.totalorder %s1190_s14, 3 }
   0x5   : > { %s1369_s15 = smov (%p34_p1, %s32_s15), 0  ;;  %p189_p3 = pnand %p1000_p0, %p188_p2 }
   0x6   : > { %s1001_s18 = sshll.u32 (!%p189_p3), %s1182_s12, 5 }
   0x7   : > { %192 = sbr.rel (%p189_p3) target bundleno = 273 (0x111), region = 32  ;;  %p230_p4 = scmp.lt.s32.totalorder (!%p189_p3), %s1001_s18, 63 }
   0xc   : > { %v1144_v0 = vld [vmem:[%s1363_s1 + $0x38] sm:$0xff]   ;;  %v1145_v1 = vld [vmem:[%s1363_s1 + $0x30] sm:$0xff]   ;;  %s1371_s18 = smov (!%p230_p4, %s1001_s18), 63  ;;  %v1146_v2 = vld [vmem:[%s1363_s1 + $0x28] sm:$0xff]  }
   0xd   : > { %1056 = vmatprep.subr.bf16.mxu0 %v1144_v0  ;;  %1104 = vmatprep.subr.bf16.mxu1 %v1144_v0  ;;  %s1002_s23 = sshll.u32 %s1371_s18, 2  ;;  %v1147_v3 = vld [vmem:[%s1363_s1 + $0x20] sm:$0xff]   ;;  %v1148_v6 = vld [vmem:[%s1363_s1 + $0x18] sm:$0xff]   ;;  %v1149_v7 = vld [vmem:[%s1363_s1 + $0x10] sm:$0xff]   ;;  %s1004_s12 = sshll.u32 %s1371_s18, 3 }
   0xe   : > { %1057 = vmatpush3.bf16.msra.mxu0 %v1144_v0  ;;  %1112 = vmatpush3.bf16.msra.mxu1 %v1144_v0  ;;  %s1245_s26 = scalar_lea.vmem %s1362_s0, %s1002_s23  ;;  %v1150_v8 = vld [vmem:[%s1363_s1 + $0x8] sm:$0xff]   ;;  %v1151_v9 = vld [vmem:[%s1363_s1] sm:$0xff]   ;;  %s1289_s19 = scalar_lea.vmem %s1365_s3, %s1004_s12 }
   0xf   : > { %1058 = vmatprep.subr.bf16.mxu0 %v1145_v1  ;;  %1105 = vmatprep.subr.bf16.mxu1 %v1145_v1  ;;  %v1152_v4 = vld [vmem:[%s1245_s26] sm:$0xff]   ;;  %v1154_v10 = vld [vmem:[%s1245_s26 + $0x8] sm:$0xff]   ;;  %v1156_v12 = vld [vmem:[%s1245_s26 + $0x10] sm:$0xff]  }
  0x10   : > { %v1153_v5 = vld [vmem:[%s1245_s26 + $0x40] sm:$0xff]   ;;  %1072 = vmatprep.mubr.bf16.mxu0 %v1152_v4  ;;  %v1155_v11 = vld [vmem:[%s1245_s26 + $0x48] sm:$0xff]   ;;  %v1157_v13 = vld [vmem:[%s1245_s26 + $0x50] sm:$0xff]  }
  0x11   : > { %1088 = vmatprep.mubr.bf16.mxu1 %v1153_v5  ;;  %v1158_v14 = vld [vmem:[%s1245_s26 + $0x18] sm:$0xff]   ;;  %v1160_v16 = vld [vmem:[%s1245_s26 + $0x20] sm:$0xff]   ;;  %v1162_v18 = vld [vmem:[%s1245_s26 + $0x28] sm:$0xff]  }
  0x12   : > { %1059 = vmatpush3.bf16.msra.mxu0 %v1145_v1  ;;  %1113 = vmatpush3.bf16.msra.mxu1 %v1145_v1  ;;  %v1159_v15 = vld [vmem:[%s1245_s26 + $0x58] sm:$0xff]   ;;  %v1161_v17 = vld [vmem:[%s1245_s26 + $0x60] sm:$0xff]   ;;  %v1163_v19 = vld [vmem:[%s1245_s26 + $0x68] sm:$0xff]  }
  0x13   : > { %1060 = vmatprep.subr.bf16.mxu0 %v1146_v2  ;;  %1106 = vmatprep.subr.bf16.mxu1 %v1146_v2  ;;  %v1164_v20 = vld [vmem:[%s1245_s26 + $0x30] sm:$0xff]   ;;  %v1166_v22 = vld [vmem:[%s1245_s26 + $0x38] sm:$0xff]   ;;  %v1281_v24 = vld [vmem:[%s1364_s2] ss:$0 sm:$0xff] }
  0x14   : > { %v1165_v21 = vld [vmem:[%s1245_s26 + $0x70] sm:$0xff]   ;;  %v1167_v23 = vld [vmem:[%s1245_s26 + $0x78] sm:$0xff]  }
  0x16   : > { %1061 = vmatpush3.bf16.msra.mxu0 %v1146_v2  ;;  %1114 = vmatpush3.bf16.msra.mxu1 %v1146_v2 }
  0x17   : > { %1062 = vmatprep.subr.bf16.mxu0 %v1147_v3  ;;  %1107 = vmatprep.subr.bf16.mxu1 %v1147_v3 }
  0x1a   : > { %1063 = vmatpush3.bf16.msra.mxu0 %v1147_v3  ;;  %1115 = vmatpush3.bf16.msra.mxu1 %v1147_v3 }
  0x1b   : > { %1064 = vmatprep.subr.bf16.mxu0 %v1148_v6  ;;  %1108 = vmatprep.subr.bf16.mxu1 %v1148_v6 }
  0x1e   : > { %1065 = vmatpush3.bf16.msra.mxu0 %v1148_v6  ;;  %1116 = vmatpush3.bf16.msra.mxu1 %v1148_v6 }
  0x1f   : > { %1066 = vmatprep.subr.bf16.mxu0 %v1149_v7  ;;  %1109 = vmatprep.subr.bf16.mxu1 %v1149_v7 }
  0x22   : > { %1067 = vmatpush3.bf16.msra.mxu0 %v1149_v7  ;;  %1117 = vmatpush3.bf16.msra.mxu1 %v1149_v7 }
  0x23   : > { %1068 = vmatprep.subr.bf16.mxu0 %v1150_v8  ;;  %1110 = vmatprep.subr.bf16.mxu1 %v1150_v8 }
  0x26   : > { %1069 = vmatpush3.bf16.msra.mxu0 %v1150_v8  ;;  %1118 = vmatpush3.bf16.msra.mxu1 %v1150_v8 }
  0x27   : > { %1070 = vmatprep.subr.bf16.mxu0 %v1151_v9  ;;  %1111 = vmatprep.subr.bf16.mxu1 %v1151_v9 }
  0x2a   : > { %1071 = vmatpush3.bf16.msra.mxu0 %v1151_v9  ;;  %1119 = vmatpush3.bf16.msra.mxu1 %v1151_v9 }
  0x2d   : > { %1073 = vmatmul.mubr.bf16.vlgmr.msra.gmra.mxu0 %v1154_v10  ;;  %1089 = vmatmul.mubr.bf16.vlgmr.msra.gmra.mxu1 %v1155_v11 }
  0x2e   : > { %1076 = vmatprep.mubr.bf16.mxu0 %v1156_v12  ;;  %1092 = vmatprep.mubr.bf16.mxu1 %v1157_v13 }
  0x35   : > { %1077 = vmatmul.mubr.bf16.gmra.mxu0 %v1158_v14  ;;  %1093 = vmatmul.mubr.bf16.gmra.mxu1 %v1159_v15 }
  0x36   : > { %1080 = vmatprep.mubr.bf16.mxu0 %v1160_v16  ;;  %1096 = vmatprep.mubr.bf16.mxu1 %v1161_v17 }
  0x3d   : > { %1081 = vmatmul.mubr.bf16.gmra.mxu0 %v1162_v18  ;;  %1097 = vmatmul.mubr.bf16.gmra.mxu1 %v1163_v19 }
  0x3e   : > { %1084 = vmatprep.mubr.bf16.mxu0 %v1164_v20  ;;  %1100 = vmatprep.mubr.bf16.mxu1 %v1165_v21 }
  0x45   : > { %1085 = vmatmul.mubr.bf16.gmra.mxu0 %v1166_v22  ;;  %1101 = vmatmul.mubr.bf16.gmra.mxu1 %v1167_v23 }
  0xed   : > { %v1074_v25 = vpop.f32.mrf.mxu0  ;;  %v1090_v26 = vpop.f32.mrf.mxu1 }
  0xee   : > { %v789_v27 = vadd.f32 %v1074_v25, %v1281_v24  ;;  %v805_v28 = vadd.f32 %v1090_v26, %v1281_v24 }
  0xef   : > { %v554_v29 = vpop.f32.mrf.mxu0  ;;  %v618_v30 = vpop.f32.mrf.mxu1 }
  0xf0   : > { %v821_v31 = vmax.f32 %v789_v27, 0.0  ;;  %v837_v32 = vmax.f32 %v805_v28, 0.0  ;;  %v787_v33 = vadd.f32 %v1281_v24, %v554_v29  ;;  %v803_v34 = vadd.f32 %v1281_v24, %v618_v30 }
  0xf1   : > { %v1075_v35 = vpop.f32.mrf.mxu0  ;;  %v1091_v36 = vpop.f32.mrf.mxu1 }
  0xf2   : > { %853 = vst [vmem:[%s1289_s19 + $0x10] sm:$0xff] %v821_v31  ;;  %869 = vst [vmem:[%s1289_s19 + $0x90] sm:$0xff] %v837_v32  ;;  %v819_v37 = vmax.f32 %v787_v33, 0.0  ;;  %v835_v38 = vmax.f32 %v803_v34, 0.0  ;;  %v790_v39 = vadd.f32 %v1075_v35, %v1281_v24  ;;  %v806_v40 = vadd.f32 %v1091_v36, %v1281_v24 }
  0xf3   : > { %v557_v41 = vpop.f32.mrf.mxu0  ;;  %v621_v42 = vpop.f32.mrf.mxu1 }
  0xf4   : > { %851 = vst [vmem:[%s1289_s19] sm:$0xff] %v819_v37  ;;  %867 = vst [vmem:[%s1289_s19 + $0x80] sm:$0xff] %v835_v38  ;;  %v822_v43 = vmax.f32 %v790_v39, 0.0  ;;  %v838_v44 = vmax.f32 %v806_v40, 0.0  ;;  %v788_v45 = vadd.f32 %v1281_v24, %v557_v41  ;;  %v804_v46 = vadd.f32 %v1281_v24, %v621_v42 }
  0xf5   : > { %v1078_v47 = vpop.f32.mrf.mxu0  ;;  %v1094_v48 = vpop.f32.mrf.mxu1 }
  0xf6   : > { %854 = vst [vmem:[%s1289_s19 + $0x18] sm:$0xff] %v822_v43  ;;  %870 = vst [vmem:[%s1289_s19 + $0x98] sm:$0xff] %v838_v44  ;;  %v820_v49 = vmax.f32 %v788_v45, 0.0  ;;  %v836_v50 = vmax.f32 %v804_v46, 0.0  ;;  %v793_v51 = vadd.f32 %v1078_v47, %v1281_v24  ;;  %v809_v52 = vadd.f32 %v1094_v48, %v1281_v24 }
  0xf7   : > { %v570_v53 = vpop.f32.mrf.mxu0  ;;  %v634_v54 = vpop.f32.mrf.mxu1 }
  0xf8   : > { %852 = vst [vmem:[%s1289_s19 + $0x8] sm:$0xff] %v820_v49  ;;  %868 = vst [vmem:[%s1289_s19 + $0x88] sm:$0xff] %v836_v50  ;;  %v825_v55 = vmax.f32 %v793_v51, 0.0  ;;  %v841_v56 = vmax.f32 %v809_v52, 0.0  ;;  %v791_v57 = vadd.f32 %v1281_v24, %v570_v53  ;;  %v807_v58 = vadd.f32 %v1281_v24, %v634_v54 }
  0xf9   : > { %v1079_v59 = vpop.f32.mrf.mxu0  ;;  %v1095_v60 = vpop.f32.mrf.mxu1 }
  0xfa   : > { %857 = vst [vmem:[%s1289_s19 + $0x30] sm:$0xff] %v825_v55  ;;  %873 = vst [vmem:[%s1289_s19 + $0xb0] sm:$0xff] %v841_v56  ;;  %v823_v61 = vmax.f32 %v791_v57, 0.0  ;;  %v839_v62 = vmax.f32 %v807_v58, 0.0  ;;  %v794_v63 = vadd.f32 %v1079_v59, %v1281_v24  ;;  %v810_v0 = vadd.f32 %v1095_v60, %v1281_v24 }
  0xfb   : > { %v573_v1 = vpop.f32.mrf.mxu0  ;;  %v637_v2 = vpop.f32.mrf.mxu1 }
  0xfc   : > { %855 = vst [vmem:[%s1289_s19 + $0x20] sm:$0xff] %v823_v61  ;;  %871 = vst [vmem:[%s1289_s19 + $0xa0] sm:$0xff] %v839_v62  ;;  %v826_v3 = vmax.f32 %v794_v63, 0.0  ;;  %v842_v4 = vmax.f32 %v810_v0, 0.0  ;;  %v792_v5 = vadd.f32 %v1281_v24, %v573_v1  ;;  %v808_v6 = vadd.f32 %v1281_v24, %v637_v2 }
  0xfd   : > { %v1082_v7 = vpop.f32.mrf.mxu0  ;;  %v1098_v8 = vpop.f32.mrf.mxu1 }
  0xfe   : > { %858 = vst [vmem:[%s1289_s19 + $0x38] sm:$0xff] %v826_v3  ;;  %874 = vst [vmem:[%s1289_s19 + $0xb8] sm:$0xff] %v842_v4  ;;  %v824_v9 = vmax.f32 %v792_v5, 0.0  ;;  %v840_v10 = vmax.f32 %v808_v6, 0.0  ;;  %v797_v11 = vadd.f32 %v1082_v7, %v1281_v24  ;;  %v813_v12 = vadd.f32 %v1098_v8, %v1281_v24 }
  0xff   : > { %v586_v13 = vpop.f32.mrf.mxu0  ;;  %v650_v14 = vpop.f32.mrf.mxu1 }
 0x100   : > { %856 = vst [vmem:[%s1289_s19 + $0x28] sm:$0xff] %v824_v9  ;;  %872 = vst [vmem:[%s1289_s19 + $0xa8] sm:$0xff] %v840_v10  ;;  %v829_v15 = vmax.f32 %v797_v11, 0.0  ;;  %v845_v16 = vmax.f32 %v813_v12, 0.0  ;;  %v795_v17 = vadd.f32 %v1281_v24, %v586_v13  ;;  %v811_v18 = vadd.f32 %v1281_v24, %v650_v14 }
 0x101   : > { %v1083_v19 = vpop.f32.mrf.mxu0  ;;  %v1099_v20 = vpop.f32.mrf.mxu1 }
 0x102   : > { %861 = vst [vmem:[%s1289_s19 + $0x50] sm:$0xff] %v829_v15  ;;  %877 = vst [vmem:[%s1289_s19 + $0xd0] sm:$0xff] %v845_v16  ;;  %v827_v21 = vmax.f32 %v795_v17, 0.0  ;;  %v843_v22 = vmax.f32 %v811_v18, 0.0  ;;  %v798_v23 = vadd.f32 %v1083_v19, %v1281_v24  ;;  %v814_v25 = vadd.f32 %v1099_v20, %v1281_v24 }
 0x103   : > { %v589_v26 = vpop.f32.mrf.mxu0  ;;  %v653_v27 = vpop.f32.mrf.mxu1 }
 0x104   : > { %859 = vst [vmem:[%s1289_s19 + $0x40] sm:$0xff] %v827_v21  ;;  %875 = vst [vmem:[%s1289_s19 + $0xc0] sm:$0xff] %v843_v22  ;;  %v830_v28 = vmax.f32 %v798_v23, 0.0  ;;  %v846_v29 = vmax.f32 %v814_v25, 0.0  ;;  %v796_v30 = vadd.f32 %v1281_v24, %v589_v26  ;;  %v812_v31 = vadd.f32 %v1281_v24, %v653_v27 }
 0x105   : > { %v1086_v32 = vpop.f32.mrf.mxu0  ;;  %v1102_v33 = vpop.f32.mrf.mxu1 }
 0x106   : > { %862 = vst [vmem:[%s1289_s19 + $0x58] sm:$0xff] %v830_v28  ;;  %878 = vst [vmem:[%s1289_s19 + $0xd8] sm:$0xff] %v846_v29  ;;  %v828_v34 = vmax.f32 %v796_v30, 0.0  ;;  %v844_v35 = vmax.f32 %v812_v31, 0.0  ;;  %v801_v36 = vadd.f32 %v1086_v32, %v1281_v24  ;;  %v817_v37 = vadd.f32 %v1102_v33, %v1281_v24 }
 0x107   : > { %v602_v38 = vpop.f32.mrf.mxu0  ;;  %v666_v39 = vpop.f32.mrf.mxu1 }
 0x108   : > { %860 = vst [vmem:[%s1289_s19 + $0x48] sm:$0xff] %v828_v34  ;;  %876 = vst [vmem:[%s1289_s19 + $0xc8] sm:$0xff] %v844_v35  ;;  %v833_v40 = vmax.f32 %v801_v36, 0.0  ;;  %v849_v41 = vmax.f32 %v817_v37, 0.0  ;;  %v799_v42 = vadd.f32 %v1281_v24, %v602_v38  ;;  %v815_v43 = vadd.f32 %v1281_v24, %v666_v39 }
 0x109   : > { %v1087_v44 = vpop.f32.mrf.mxu0  ;;  %v1103_v45 = vpop.f32.mrf.mxu1 }
 0x10a   : > { %865 = vst [vmem:[%s1289_s19 + $0x70] sm:$0xff] %v833_v40  ;;  %881 = vst [vmem:[%s1289_s19 + $0xf0] sm:$0xff] %v849_v41  ;;  %v831_v46 = vmax.f32 %v799_v42, 0.0  ;;  %v847_v47 = vmax.f32 %v815_v43, 0.0  ;;  %v802_v48 = vadd.f32 %v1087_v44, %v1281_v24  ;;  %v818_v49 = vadd.f32 %v1103_v45, %v1281_v24 }
 0x10b   : > { %v605_v50 = vpop.f32.mrf.mxu0  ;;  %v669_v51 = vpop.f32.mrf.mxu1 }
 0x10c   : > { %863 = vst [vmem:[%s1289_s19 + $0x60] sm:$0xff] %v831_v46  ;;  %879 = vst [vmem:[%s1289_s19 + $0xe0] sm:$0xff] %v847_v47  ;;  %v834_v52 = vmax.f32 %v802_v48, 0.0  ;;  %v850_v53 = vmax.f32 %v818_v49, 0.0  ;;  %v800_v54 = vadd.f32 %v1281_v24, %v605_v50  ;;  %v816_v55 = vadd.f32 %v1281_v24, %v669_v51 }
 0x10e   : > { %866 = vst [vmem:[%s1289_s19 + $0x78] sm:$0xff] %v834_v52  ;;  %882 = vst [vmem:[%s1289_s19 + $0xf8] sm:$0xff] %v850_v53  ;;  %v832_v56 = vmax.f32 %v800_v54, 0.0  ;;  %v848_v57 = vmax.f32 %v816_v55, 0.0 }
 0x110   : > { %864 = vst [vmem:[%s1289_s19 + $0x68] sm:$0xff] %v832_v56  ;;  %880 = vst [vmem:[%s1289_s19 + $0xe8] sm:$0xff] %v848_v57 }
 0x111 PF: > { %s13_s14 = sadd.s32 1, %s1190_s14   ;;  %s1366_s12 = smov %s1186_s13 }
 0x112   : > { %p10_p5 = scmp.ge.s32.totalorder %s13_s14, 4   ;;  %s1367_s13 = smov %s1369_s15 }
 0x114   :  { %12 = sbr.rel (!%p10_p5) target bundleno = 2 (0x2), region = 76 }

// kernel: bmn_forward.19
= control target key start
LH: loop header
LB: loop body
LE: loop exit
PB: predicated region body
PF: predicated region fallthrough
CT: control target
= control target key end

     0   :  { %s1468_s12 = smov 0   ;;  %s1470_s13 = smov 0   ;;  %s1618_s0 = inlined_call_operand.vmem [shape: bf16[512,128], index: 0, kind: input, shape index: {}]   ;;  %s1619_s1 = inlined_call_operand.vmem [shape: bf16[128,128], index: 1, kind: input, shape index: {}]   ;;  %s1620_s2 = inlined_call_operand.vmem [shape: f32[1,128], index: 2, kind: input, shape index: {}]   ;;  %s1621_s3 = inlined_call_operand.vmem [shape: f32[512,128], index: 3, kind: output, shape index: {}]  }
   0x1   :  { %s1472_s14 = smov 0  }
   0x2 LB: > { %s32_s15 = sadd.s32 1, %s1442_s13  ;;  %p1128_p0 = scmp.ge.s32.totalorder %s1446_s14, 1  ;;  %s1446_s14 = sphi %s1472_s14, %s13_s14   ;;  %s1442_s13 = sphi %s1470_s13, %s1623_s13   ;;  %s1438_s12 = sphi %s1468_s12, %s1622_s12  }
   0x3   : > { %p34_p1 = scmp.ge.s32.totalorder %s32_s15, 2  ;;  %p188_p2 = scmp.lt.s32.totalorder %s1446_s14, 3 }
   0x5   : > { %s1625_s15 = smov (%p34_p1, %s32_s15), 0  ;;  %p189_p3 = pnand %p1128_p0, %p188_p2 }
   0x6   : > { %s1129_s18 = sshll.u32 (!%p189_p3), %s1438_s12, 5 }
   0x7   : > { %192 = sbr.rel (%p189_p3) target bundleno = 327 (0x147), region = 32  ;;  %p230_p4 = scmp.lt.s32.totalorder (!%p189_p3), %s1129_s18, 63 }
   0xc   : > { %v1272_v0 = vld [vmem:[%s1619_s1 + $0x38] sm:$0xff]   ;;  %v1273_v1 = vld [vmem:[%s1619_s1 + $0x30] sm:$0xff]   ;;  %s1627_s18 = smov (!%p230_p4, %s1129_s18), 63  ;;  %v1274_v2 = vld [vmem:[%s1619_s1 + $0x28] sm:$0xff]  }
   0xd   : > { %1184 = vmatprep.subr.bf16.mxu0 %v1272_v0  ;;  %1232 = vmatprep.subr.bf16.mxu1 %v1272_v0  ;;  %s1130_s23 = sshll.u32 %s1627_s18, 2  ;;  %v1275_v3 = vld [vmem:[%s1619_s1 + $0x20] sm:$0xff]   ;;  %v1276_v6 = vld [vmem:[%s1619_s1 + $0x18] sm:$0xff]   ;;  %v1277_v7 = vld [vmem:[%s1619_s1 + $0x10] sm:$0xff]   ;;  %s1132_s12 = sshll.u32 %s1627_s18, 3 }
   0xe   : > { %1185 = vmatpush3.bf16.msra.mxu0 %v1272_v0  ;;  %1240 = vmatpush3.bf16.msra.mxu1 %v1272_v0  ;;  %s1501_s26 = scalar_lea.vmem %s1618_s0, %s1130_s23  ;;  %v1278_v8 = vld [vmem:[%s1619_s1 + $0x8] sm:$0xff]   ;;  %v1279_v9 = vld [vmem:[%s1619_s1] sm:$0xff]   ;;  %s1565_s18 = scalar_lea.vmem %s1621_s3, %s1132_s12 }
   0xf   : > { %1186 = vmatprep.subr.bf16.mxu0 %v1273_v1  ;;  %1233 = vmatprep.subr.bf16.mxu1 %v1273_v1  ;;  %v1280_v4 = vld [vmem:[%s1501_s26] sm:$0xff]   ;;  %v1282_v10 = vld [vmem:[%s1501_s26 + $0x8] sm:$0xff]   ;;  %v1284_v12 = vld [vmem:[%s1501_s26 + $0x10] sm:$0xff]  }
  0x10   : > { %v1281_v5 = vld [vmem:[%s1501_s26 + $0x40] sm:$0xff]   ;;  %1200 = vmatprep.mubr.bf16.mxu0 %v1280_v4  ;;  %v1283_v11 = vld [vmem:[%s1501_s26 + $0x48] sm:$0xff]   ;;  %v1285_v13 = vld [vmem:[%s1501_s26 + $0x50] sm:$0xff]  }
  0x11   : > { %1216 = vmatprep.mubr.bf16.mxu1 %v1281_v5  ;;  %v1286_v14 = vld [vmem:[%s1501_s26 + $0x18] sm:$0xff]   ;;  %v1288_v16 = vld [vmem:[%s1501_s26 + $0x20] sm:$0xff]   ;;  %v1290_v18 = vld [vmem:[%s1501_s26 + $0x28] sm:$0xff]  }
  0x12   : > { %1187 = vmatpush3.bf16.msra.mxu0 %v1273_v1  ;;  %1241 = vmatpush3.bf16.msra.mxu1 %v1273_v1  ;;  %v1287_v15 = vld [vmem:[%s1501_s26 + $0x58] sm:$0xff]   ;;  %v1289_v17 = vld [vmem:[%s1501_s26 + $0x60] sm:$0xff]   ;;  %v1291_v19 = vld [vmem:[%s1501_s26 + $0x68] sm:$0xff]  }
  0x13   : > { %1188 = vmatprep.subr.bf16.mxu0 %v1274_v2  ;;  %1234 = vmatprep.subr.bf16.mxu1 %v1274_v2  ;;  %v1292_v20 = vld [vmem:[%s1501_s26 + $0x30] sm:$0xff]   ;;  %v1294_v22 = vld [vmem:[%s1501_s26 + $0x38] sm:$0xff]   ;;  %v1537_v24 = vld [vmem:[%s1620_s2] ss:$0 sm:$0xff] }
  0x14   : > { %v1293_v21 = vld [vmem:[%s1501_s26 + $0x70] sm:$0xff]   ;;  %v1295_v23 = vld [vmem:[%s1501_s26 + $0x78] sm:$0xff]  }
  0x16   : > { %1189 = vmatpush3.bf16.msra.mxu0 %v1274_v2  ;;  %1242 = vmatpush3.bf16.msra.mxu1 %v1274_v2 }
  0x17   : > { %1190 = vmatprep.subr.bf16.mxu0 %v1275_v3  ;;  %1235 = vmatprep.subr.bf16.mxu1 %v1275_v3 }
  0x1a   : > { %1191 = vmatpush3.bf16.msra.mxu0 %v1275_v3  ;;  %1243 = vmatpush3.bf16.msra.mxu1 %v1275_v3 }
  0x1b   : > { %1192 = vmatprep.subr.bf16.mxu0 %v1276_v6  ;;  %1236 = vmatprep.subr.bf16.mxu1 %v1276_v6 }
  0x1e   : > { %1193 = vmatpush3.bf16.msra.mxu0 %v1276_v6  ;;  %1244 = vmatpush3.bf16.msra.mxu1 %v1276_v6 }
  0x1f   : > { %1194 = vmatprep.subr.bf16.mxu0 %v1277_v7  ;;  %1237 = vmatprep.subr.bf16.mxu1 %v1277_v7 }
  0x22   : > { %1195 = vmatpush3.bf16.msra.mxu0 %v1277_v7  ;;  %1245 = vmatpush3.bf16.msra.mxu1 %v1277_v7 }
  0x23   : > { %1196 = vmatprep.subr.bf16.mxu0 %v1278_v8  ;;  %1238 = vmatprep.subr.bf16.mxu1 %v1278_v8 }
  0x26   : > { %1197 = vmatpush3.bf16.msra.mxu0 %v1278_v8  ;;  %1246 = vmatpush3.bf16.msra.mxu1 %v1278_v8 }
  0x27   : > { %1198 = vmatprep.subr.bf16.mxu0 %v1279_v9  ;;  %1239 = vmatprep.subr.bf16.mxu1 %v1279_v9 }
  0x2a   : > { %1199 = vmatpush3.bf16.msra.mxu0 %v1279_v9  ;;  %1247 = vmatpush3.bf16.msra.mxu1 %v1279_v9 }
  0x2d   : > { %1201 = vmatmul.mubr.bf16.vlgmr.msra.gmra.mxu0 %v1282_v10  ;;  %1217 = vmatmul.mubr.bf16.vlgmr.msra.gmra.mxu1 %v1283_v11 }
  0x2e   : > { %1204 = vmatprep.mubr.bf16.mxu0 %v1284_v12  ;;  %1220 = vmatprep.mubr.bf16.mxu1 %v1285_v13 }
  0x35   : > { %1205 = vmatmul.mubr.bf16.gmra.mxu0 %v1286_v14  ;;  %1221 = vmatmul.mubr.bf16.gmra.mxu1 %v1287_v15 }
  0x36   : > { %1208 = vmatprep.mubr.bf16.mxu0 %v1288_v16  ;;  %1224 = vmatprep.mubr.bf16.mxu1 %v1289_v17 }
  0x3d   : > { %1209 = vmatmul.mubr.bf16.gmra.mxu0 %v1290_v18  ;;  %1225 = vmatmul.mubr.bf16.gmra.mxu1 %v1291_v19 }
  0x3e   : > { %1212 = vmatprep.mubr.bf16.mxu0 %v1292_v20  ;;  %1228 = vmatprep.mubr.bf16.mxu1 %v1293_v21 }
  0x45   : > { %1213 = vmatmul.mubr.bf16.gmra.mxu0 %v1294_v22  ;;  %1229 = vmatmul.mubr.bf16.gmra.mxu1 %v1295_v23 }
  0xed   : > { %v1202_v25 = vpop.f32.mrf.mxu0  ;;  %v1218_v26 = vpop.f32.mrf.mxu1 }
  0xee   : > { %v789_v27 = vadd.f32 %v1202_v25, %v1537_v24  ;;  %v805_v28 = vadd.f32 %v1218_v26, %v1537_v24 }
  0xef   : > { %v554_v29 = vpop.f32.mrf.mxu0  ;;  %v618_v30 = vpop.f32.mrf.mxu1 }
  0xf0   : > { %v821_v31 = vsub.f32 0.0, %v789_v27  ;;  %v837_v32 = vsub.f32 0.0, %v805_v28  ;;  %v787_v33 = vadd.f32 %v1537_v24, %v554_v29  ;;  %v803_v34 = vadd.f32 %v1537_v24, %v618_v30 }
  0xf1   : > { %v1203_v35 = vpop.f32.mrf.mxu0  ;;  %v1219_v36 = vpop.f32.mrf.mxu1 }
  0xf2   : > { %v855_v37 = vmul.f32 1.442695, %v821_v31  ;;  %v887_v38 = vmul.f32 1.442695, %v837_v32  ;;  %v819_v39 = vsub.f32 0.0, %v787_v33  ;;  %v835_v40 = vsub.f32 0.0, %v803_v34 }
  0xf3   : > { %v790_v41 = vadd.f32 %v1203_v35, %v1537_v24  ;;  %v806_v42 = vadd.f32 %v1219_v36, %v1537_v24  ;;  %v557_v43 = vpop.f32.mrf.mxu0  ;;  %v621_v44 = vpop.f32.mrf.mxu1 }
  0xf4   : > { %1296 = vpow2.f32 %v855_v37  ;;  %v851_v45 = vmul.f32 1.442695, %v819_v39  ;;  %v883_v46 = vmul.f32 1.442695, %v835_v40  ;;  %v788_v47 = vadd.f32 %v1537_v24, %v557_v43 }
  0xf5   : > { %1298 = vpow2.f32 %v887_v38  ;;  %v822_v48 = vsub.f32 0.0, %v790_v41  ;;  %v838_v49 = vsub.f32 0.0, %v806_v42  ;;  %v804_v50 = vadd.f32 %v1537_v24, %v621_v44  ;;  %v1206_v51 = vpop.f32.mrf.mxu0  ;;  %v1222_v52 = vpop.f32.mrf.mxu1 }
  0xf6   : > { %1300 = vpow2.f32 %v851_v45  ;;  %v820_v53 = vsub.f32 0.0, %v788_v47  ;;  %v793_v54 = vadd.f32 %v1206_v51, %v1537_v24  ;;  %v809_v55 = vadd.f32 %v1222_v52, %v1537_v24 }
  0xf7   : > { %1302 = vpow2.f32 %v883_v46  ;;  %v857_v56 = vmul.f32 1.442695, %v822_v48  ;;  %v889_v57 = vmul.f32 1.442695, %v838_v49  ;;  %v836_v58 = vsub.f32 0.0, %v804_v50  ;;  %v570_v59 = vpop.f32.mrf.mxu0  ;;  %v634_v60 = vpop.f32.mrf.mxu1 }
  0xf8   : > { %v853_v61 = vmul.f32 1.442695, %v820_v53  ;;  %v825_v62 = vsub.f32 0.0, %v793_v54  ;;  %v841_v63 = vsub.f32 0.0, %v809_v55  ;;  %v791_v0 = vadd.f32 %v1537_v24, %v570_v59 }
  0xf9   : > { %1304 = vpow2.f32 %v857_v56  ;;  %v885_v1 = vmul.f32 1.442695, %v836_v58  ;;  %v807_v2 = vadd.f32 %v1537_v24, %v634_v60  ;;  %v1207_v3 = vpop.f32.mrf.mxu0  ;;  %v1223_v4 = vpop.f32.mrf.mxu1 }
  0xfa   : > { %1306 = vpow2.f32 %v889_v57  ;;  %v863_v5 = vmul.f32 1.442695, %v825_v62  ;;  %v895_v6 = vmul.f32 1.442695, %v841_v63  ;;  %v823_v7 = vsub.f32 0.0, %v791_v0 }
  0xfb   : > { %1308 = vpow2.f32 %v853_v61  ;;  %v839_v8 = vsub.f32 0.0, %v807_v2  ;;  %v794_v9 = vadd.f32 %v1207_v3, %v1537_v24  ;;  %v810_v10 = vadd.f32 %v1223_v4, %v1537_v24  ;;  %v573_v11 = vpop.f32.mrf.mxu0  ;;  %v637_v12 = vpop.f32.mrf.mxu1 }
  0xfc   : > { %1310 = vpow2.f32 %v885_v1  ;;  %v859_v13 = vmul.f32 1.442695, %v823_v7  ;;  %v792_v14 = vadd.f32 %v1537_v24, %v573_v11  ;;  %v808_v15 = vadd.f32 %v1537_v24, %v637_v12 }
  0xfd   : > { %1312 = vpow2.f32 %v863_v5  ;;  %v891_v16 = vmul.f32 1.442695, %v839_v8  ;;  %v826_v17 = vsub.f32 0.0, %v794_v9  ;;  %v842_v18 = vsub.f32 0.0, %v810_v10  ;;  %v1210_v19 = vpop.f32.mrf.mxu0  ;;  %v1226_v20 = vpop.f32.mrf.mxu1 }
  0xfe   : > { %1314 = vpow2.f32 %v895_v6  ;;  %v824_v21 = vsub.f32 0.0, %v792_v14  ;;  %v840_v28 = vsub.f32 0.0, %v808_v15  ;;  %v797_v41 = vadd.f32 %v1210_v19, %v1537_v24 }
  0xff   : > { %1316 = vpow2.f32 %v859_v13  ;;  %v865_v22 = vmul.f32 1.442695, %v826_v17  ;;  %v897_v23 = vmul.f32 1.442695, %v842_v18  ;;  %v586_v25 = vpop.f32.mrf.mxu0  ;;  %v650_v26 = vpop.f32.mrf.mxu1  ;;  %v813_v43 = vadd.f32 %v1226_v20, %v1537_v24 }
 0x100   : > { %1318 = vpow2.f32 %v891_v16  ;;  %v861_v27 = vmul.f32 1.442695, %v824_v21  ;;  %v893_v38 = vmul.f32 1.442695, %v840_v28  ;;  %v829_v52 = vsub.f32 0.0, %v797_v41 }
 0x101   : > { %v1297_v29 = vpop.eup %1296  ;;  %1320 = vpow2.f32 %v865_v22  ;;  %v1211_v30 = vpop.f32.mrf.mxu0  ;;  %v845_v55 = vsub.f32 0.0, %v813_v43  ;;  %v795_v56 = vadd.f32 %v1537_v24, %v586_v25  ;;  %v811_v59 = vadd.f32 %v1537_v24, %v650_v26 }
 0x102   : > { %v1299_v31 = vpop.eup %1298  ;;  %v917_v32 = vadd.f32 1.0, %v1297_v29  ;;  %1322 = vpow2.f32 %v897_v23  ;;  %v1227_v35 = vpop.f32.mrf.mxu1  ;;  %v798_v63 = vadd.f32 %v1211_v30, %v1537_v24  ;;  %v871_v3 = vmul.f32 1.442695, %v829_v52 }
 0x103   : > { %v1301_v33 = vpop.eup %1300  ;;  %v933_v34 = vadd.f32 1.0, %v1299_v31  ;;  %1324 = vpow2.f32 %v861_v27  ;;  %v589_v39 = vpop.f32.mrf.mxu0  ;;  %v814_v4 = vadd.f32 %v1227_v35, %v1537_v24  ;;  %v903_v7 = vmul.f32 1.442695, %v845_v55 }
 0x104   : > { %v1303_v36 = vpop.eup %1302  ;;  %1326 = vrcp.f32 %v917_v32  ;;  %v915_v37 = vadd.f32 1.0, %v1301_v33  ;;  %v653_v46 = vpop.f32.mrf.mxu1  ;;  %v827_v8 = vsub.f32 0.0, %v795_v56  ;;  %v843_v11 = vsub.f32 0.0, %v811_v59 }
 0x105   : > { %1328 = vrcp.f32 %v933_v34  ;;  %v931_v40 = vadd.f32 1.0, %v1303_v36  ;;  %v1214_v49 = vpop.f32.mrf.mxu0  ;;  %v796_v12 = vadd.f32 %v1537_v24, %v589_v39  ;;  %v830_v16 = vsub.f32 0.0, %v798_v63 }
 0x106   : > { %v1305_v42 = vpop.eup %1304  ;;  %1330 = vrcp.f32 %v915_v37  ;;  %v1230_v60 = vpop.f32.mrf.mxu1  ;;  %v812_v17 = vadd.f32 %v1537_v24, %v653_v46  ;;  %v846_v21 = vsub.f32 0.0, %v814_v4  ;;  %v801_v22 = vadd.f32 %v1214_v49, %v1537_v24 }
 0x107   : > { %v1307_v44 = vpop.eup %1306  ;;  %1332 = vrcp.f32 %v931_v40  ;;  %v918_v45 = vadd.f32 1.0, %v1305_v42  ;;  %v602_v0 = vpop.f32.mrf.mxu0  ;;  %v867_v25 = vmul.f32 1.442695, %v827_v8  ;;  %v817_v26 = vadd.f32 %v1230_v60, %v1537_v24 }
 0x108   : > { %v1309_v47 = vpop.eup %1308  ;;  %v934_v48 = vadd.f32 1.0, %v1307_v44  ;;  %1334 = vpow2.f32 %v893_v38  ;;  %v666_v13 = vpop.f32.mrf.mxu1  ;;  %v899_v28 = vmul.f32 1.442695, %v843_v11  ;;  %v828_v29 = vsub.f32 0.0, %v796_v12 }
 0x109   : > { %v1311_v50 = vpop.eup %1310  ;;  %1336 = vrcp.f32 %v918_v45  ;;  %v916_v51 = vadd.f32 1.0, %v1309_v47  ;;  %v1215_v18 = vpop.f32.mrf.mxu0  ;;  %v799_v30 = vadd.f32 %v1537_v24, %v602_v0  ;;  %v873_v33 = vmul.f32 1.442695, %v830_v16 }
 0x10a   : > { %v1313_v53 = vpop.eup %1312  ;;  %1338 = vrcp.f32 %v934_v48  ;;  %v932_v54 = vadd.f32 1.0, %v1311_v50  ;;  %v1231_v31 = vpop.f32.mrf.mxu1  ;;  %v844_v34 = vsub.f32 0.0, %v812_v17  ;;  %v815_v35 = vadd.f32 %v1537_v24, %v666_v13 }
 0x10b   : > { %v1315_v57 = vpop.eup %1314  ;;  %1340 = vrcp.f32 %v916_v51  ;;  %v921_v58 = vadd.f32 1.0, %v1313_v53  ;;  %v605_v36 = vpop.f32.mrf.mxu0  ;;  %v905_v38 = vmul.f32 1.442695, %v846_v21  ;;  %v833_v39 = vsub.f32 0.0, %v801_v22 }
 0x10c   : > { %v1317_v61 = vpop.eup %1316  ;;  %1342 = vrcp.f32 %v932_v54  ;;  %v937_v62 = vadd.f32 1.0, %v1315_v57  ;;  %v802_v40 = vadd.f32 %v1215_v18, %v1537_v24  ;;  %v849_v43 = vsub.f32 0.0, %v817_v26  ;;  %v669_v55 = vpop.f32.mrf.mxu1 }
 0x10d   : > { %v1319_v1 = vpop.eup %1318  ;;  %1344 = vrcp.f32 %v921_v58  ;;  %v919_v2 = vadd.f32 1.0, %v1317_v61  ;;  %v818_v44 = vadd.f32 %v1231_v31, %v1537_v24  ;;  %v869_v46 = vmul.f32 1.442695, %v828_v29 }
 0x10e   : > { %v1321_v5 = vpop.eup %1320  ;;  %1346 = vrcp.f32 %v937_v62  ;;  %v935_v6 = vadd.f32 1.0, %v1319_v1  ;;  %v831_v47 = vsub.f32 0.0, %v799_v30  ;;  %v800_v48 = vadd.f32 %v1537_v24, %v605_v36 }
 0x10f   : > { %v1323_v9 = vpop.eup %1322  ;;  %1348 = vrcp.f32 %v919_v2  ;;  %v922_v10 = vadd.f32 1.0, %v1321_v5  ;;  %v901_v50 = vmul.f32 1.442695, %v844_v34  ;;  %v847_v51 = vsub.f32 0.0, %v815_v35 }
 0x110   : > { %v1325_v14 = vpop.eup %1324  ;;  %1350 = vrcp.f32 %v935_v6  ;;  %v938_v15 = vadd.f32 1.0, %v1323_v9  ;;  %v879_v53 = vmul.f32 1.442695, %v833_v39  ;;  %v834_v54 = vsub.f32 0.0, %v802_v40 }
 0x111   : > { %v1327_v19 = vpop.eup %1326  ;;  %1352 = vrcp.f32 %v922_v10  ;;  %v920_v20 = vadd.f32 1.0, %v1325_v14  ;;  %v911_v57 = vmul.f32 1.442695, %v849_v43  ;;  %v850_v58 = vsub.f32 0.0, %v818_v44 }
 0x112   : > { %v1329_v23 = vpop.eup %1328  ;;  %981 = vst [vmem:[%s1565_s18 + $0x10] sm:$0xff] %v1327_v19  ;;  %1354 = vrcp.f32 %v938_v15  ;;  %v875_v60 = vmul.f32 1.442695, %v831_v47  ;;  %v832_v61 = vsub.f32 0.0, %v800_v48  ;;  %v907_v63 = vmul.f32 1.442695, %v847_v51 }
 0x113   : > { %v1331_v27 = vpop.eup %1330  ;;  %997 = vst [vmem:[%s1565_s18 + $0x90] sm:$0xff] %v1329_v23  ;;  %1356 = vrcp.f32 %v920_v20  ;;  %v816_v0 = vadd.f32 %v1537_v24, %v669_v55  ;;  %v881_v2 = vmul.f32 1.442695, %v834_v54  ;;  %v913_v4 = vmul.f32 1.442695, %v850_v58 }
 0x114   : > { %v1333_v32 = vpop.eup %1332  ;;  %979 = vst [vmem:[%s1565_s18] sm:$0xff] %v1331_v27  ;;  %1358 = vpow2.f32 %v871_v3  ;;  %v877_v6 = vmul.f32 1.442695, %v832_v61 }
 0x115   : > { %v1335_v37 = vpop.eup %1334  ;;  %995 = vst [vmem:[%s1565_s18 + $0x80] sm:$0xff] %v1333_v32  ;;  %1360 = vpow2.f32 %v903_v7  ;;  %v848_v8 = vsub.f32 0.0, %v816_v0 }
 0x116   : > { %v1337_v41 = vpop.eup %1336  ;;  %v936_v42 = vadd.f32 1.0, %v1335_v37  ;;  %1362 = vpow2.f32 %v867_v25 }
 0x117   : > { %v1339_v45 = vpop.eup %1338  ;;  %982 = vst [vmem:[%s1565_s18 + $0x18] sm:$0xff] %v1337_v41  ;;  %1364 = vpow2.f32 %v899_v28  ;;  %v909_v15 = vmul.f32 1.442695, %v848_v8 }
 0x118   : > { %v1341_v49 = vpop.eup %1340  ;;  %998 = vst [vmem:[%s1565_s18 + $0x98] sm:$0xff] %v1339_v45  ;;  %1366 = vrcp.f32 %v936_v42 }
 0x119   : > { %v1343_v52 = vpop.eup %1342  ;;  %980 = vst [vmem:[%s1565_s18 + $0x8] sm:$0xff] %v1341_v49  ;;  %1368 = vpow2.f32 %v873_v33 }
 0x11a   : > { %v1345_v56 = vpop.eup %1344  ;;  %996 = vst [vmem:[%s1565_s18 + $0x88] sm:$0xff] %v1343_v52  ;;  %1370 = vpow2.f32 %v905_v38 }
 0x11b   : > { %v1347_v59 = vpop.eup %1346  ;;  %985 = vst [vmem:[%s1565_s18 + $0x30] sm:$0xff] %v1345_v56  ;;  %1372 = vpow2.f32 %v869_v46 }
 0x11c   : > { %v1349_v62 = vpop.eup %1348  ;;  %1001 = vst [vmem:[%s1565_s18 + $0xb0] sm:$0xff] %v1347_v59  ;;  %1374 = vpow2.f32 %v901_v50 }
 0x11d   : > { %v1351_v1 = vpop.eup %1350  ;;  %983 = vst [vmem:[%s1565_s18 + $0x20] sm:$0xff] %v1349_v62  ;;  %1376 = vpow2.f32 %v879_v53 }
 0x11e   : > { %v1353_v3 = vpop.eup %1352  ;;  %999 = vst [vmem:[%s1565_s18 + $0xa0] sm:$0xff] %v1351_v1  ;;  %1378 = vpow2.f32 %v911_v57 }
 0x11f   : > { %v1355_v5 = vpop.eup %1354  ;;  %986 = vst [vmem:[%s1565_s18 + $0x38] sm:$0xff] %v1353_v3  ;;  %1380 = vpow2.f32 %v875_v60 }
 0x120   : > { %v1357_v7 = vpop.eup %1356  ;;  %1002 = vst [vmem:[%s1565_s18 + $0xb8] sm:$0xff] %v1355_v5  ;;  %1382 = vpow2.f32 %v907_v63 }
 0x121   : > { %v1359_v9 = vpop.eup %1358  ;;  %984 = vst [vmem:[%s1565_s18 + $0x28] sm:$0xff] %v1357_v7  ;;  %1384 = vpow2.f32 %v881_v2 }
 0x122   : > { %v1361_v24 = vpop.eup %1360  ;;  %v925_v10 = vadd.f32 1.0, %v1359_v9  ;;  %1386 = vpow2.f32 %v913_v4 }
 0x123   : > { %v1363_v11 = vpop.eup %1362  ;;  %v941_v12 = vadd.f32 1.0, %v1361_v24  ;;  %1388 = vpow2.f32 %v877_v6 }
 0x124   : > { %v1365_v13 = vpop.eup %1364  ;;  %1390 = vrcp.f32 %v925_v10  ;;  %v923_v14 = vadd.f32 1.0, %v1363_v11 }
 0x125   : > { %v1367_v16 = vpop.eup %1366  ;;  %1392 = vrcp.f32 %v941_v12  ;;  %v939_v17 = vadd.f32 1.0, %v1365_v13 }
 0x126   : > { %v1369_v18 = vpop.eup %1368  ;;  %1000 = vst [vmem:[%s1565_s18 + $0xa8] sm:$0xff] %v1367_v16  ;;  %1394 = vrcp.f32 %v923_v14 }
 0x127   : > { %v1371_v19 = vpop.eup %1370  ;;  %1396 = vrcp.f32 %v939_v17  ;;  %v926_v20 = vadd.f32 1.0, %v1369_v18 }
 0x128   : > { %v1373_v21 = vpop.eup %1372  ;;  %v942_v22 = vadd.f32 1.0, %v1371_v19  ;;  %1398 = vpow2.f32 %v909_v15 }
 0x129   : > { %v1375_v23 = vpop.eup %1374  ;;  %1400 = vrcp.f32 %v926_v20  ;;  %v924_v25 = vadd.f32 1.0, %v1373_v21 }
 0x12a   : > { %v1377_v26 = vpop.eup %1376  ;;  %1402 = vrcp.f32 %v942_v22  ;;  %v940_v27 = vadd.f32 1.0, %v1375_v23 }
 0x12b   : > { %v1379_v28 = vpop.eup %1378  ;;  %1404 = vrcp.f32 %v924_v25  ;;  %v929_v29 = vadd.f32 1.0, %v1377_v26 }
 0x12c   : > { %v1381_v30 = vpop.eup %1380  ;;  %1406 = vrcp.f32 %v940_v27  ;;  %v945_v31 = vadd.f32 1.0, %v1379_v28 }
 0x12d   : > { %v1383_v32 = vpop.eup %1382  ;;  %1408 = vrcp.f32 %v929_v29  ;;  %v927_v33 = vadd.f32 1.0, %v1381_v30 }
 0x12e   : > { %v1385_v34 = vpop.eup %1384  ;;  %1410 = vrcp.f32 %v945_v31  ;;  %v943_v35 = vadd.f32 1.0, %v1383_v32 }
 0x12f   : > { %v1387_v36 = vpop.eup %1386  ;;  %1412 = vrcp.f32 %v927_v33  ;;  %v930_v37 = vadd.f32 1.0, %v1385_v34 }
 0x130   : > { %v1389_v38 = vpop.eup %1388  ;;  %1414 = vrcp.f32 %v943_v35  ;;  %v946_v39 = vadd.f32 1.0, %v1387_v36 }
 0x131   : > { %v1391_v40 = vpop.eup %1390  ;;  %1416 = vrcp.f32 %v930_v37  ;;  %v928_v41 = vadd.f32 1.0, %v1389_v38 }
 0x132   : > { %v1393_v42 = vpop.eup %1392  ;;  %989 = vst [vmem:[%s1565_s18 + $0x50] sm:$0xff] %v1391_v40  ;;  %1418 = vrcp.f32 %v946_v39 }
 0x133   : > { %v1395_v43 = vpop.eup %1394  ;;  %1005 = vst [vmem:[%s1565_s18 + $0xd0] sm:$0xff] %v1393_v42  ;;  %1420 = vrcp.f32 %v928_v41 }
 0x134   : > { %v1397_v44 = vpop.eup %1396  ;;  %987 = vst [vmem:[%s1565_s18 + $0x40] sm:$0xff] %v1395_v43 }
 0x135   : > { %v1399_v45 = vpop.eup %1398  ;;  %1003 = vst [vmem:[%s1565_s18 + $0xc0] sm:$0xff] %v1397_v44 }
 0x136   : > { %v1401_v46 = vpop.eup %1400  ;;  %v944_v47 = vadd.f32 1.0, %v1399_v45 }
 0x137   : > { %v1403_v48 = vpop.eup %1402  ;;  %990 = vst [vmem:[%s1565_s18 + $0x58] sm:$0xff] %v1401_v46 }
 0x138   : > { %v1405_v49 = vpop.eup %1404  ;;  %1006 = vst [vmem:[%s1565_s18 + $0xd8] sm:$0xff] %v1403_v48  ;;  %1422 = vrcp.f32 %v944_v47 }
 0x139   : > { %v1407_v50 = vpop.eup %1406  ;;  %988 = vst [vmem:[%s1565_s18 + $0x48] sm:$0xff] %v1405_v49 }
 0x13a   : > { %v1409_v51 = vpop.eup %1408  ;;  %1004 = vst [vmem:[%s1565_s18 + $0xc8] sm:$0xff] %v1407_v50 }
 0x13b   : > { %v1411_v52 = vpop.eup %1410  ;;  %993 = vst [vmem:[%s1565_s18 + $0x70] sm:$0xff] %v1409_v51 }
 0x13c   : > { %v1413_v53 = vpop.eup %1412  ;;  %1009 = vst [vmem:[%s1565_s18 + $0xf0] sm:$0xff] %v1411_v52 }
 0x13d   : > { %v1415_v54 = vpop.eup %1414  ;;  %991 = vst [vmem:[%s1565_s18 + $0x60] sm:$0xff] %v1413_v53 }
 0x13e   : > { %v1417_v55 = vpop.eup %1416  ;;  %1007 = vst [vmem:[%s1565_s18 + $0xe0] sm:$0xff] %v1415_v54 }
 0x13f   : > { %v1419_v56 = vpop.eup %1418  ;;  %994 = vst [vmem:[%s1565_s18 + $0x78] sm:$0xff] %v1417_v55 }
 0x140   : > { %v1421_v57 = vpop.eup %1420  ;;  %1010 = vst [vmem:[%s1565_s18 + $0xf8] sm:$0xff] %v1419_v56 }
 0x141   : > { %992 = vst [vmem:[%s1565_s18 + $0x68] sm:$0xff] %v1421_v57 }
 0x145   : > { %v1423_v58 = vpop.eup %1422 }
 0x146   : > { %1008 = vst [vmem:[%s1565_s18 + $0xe8] sm:$0xff] %v1423_v58 }
 0x147 PF: > { %s13_s14 = sadd.s32 1, %s1446_s14   ;;  %s1622_s12 = smov %s1442_s13 }
 0x148   : > { %p10_p5 = scmp.ge.s32.totalorder %s13_s14, 4   ;;  %s1623_s13 = smov %s1625_s15 }
 0x14a   :  { %12 = sbr.rel (!%p10_p5) target bundleno = 2 (0x2), region = 76 }

// kernel: bmn_forward.13
= control target key start
LH: loop header
LB: loop body
LE: loop exit
PB: predicated region body
PF: predicated region fallthrough
CT: control target
= control target key end

     0   :  { %s342_s1 = inlined_call_operand.vmem [shape: bf16[128,128], index: 1, kind: input, shape index: {}]   ;;  %s343_s0 = inlined_call_operand.vmem [shape: bf16[32,128], index: 0, kind: input, shape index: {}]   ;;  %s344_s2 = inlined_call_operand.vmem [shape: f32[1,128], index: 2, kind: input, shape index: {}]   ;;  %s345_s3 = inlined_call_operand.vmem [shape: f32[32,128], index: 3, kind: output, shape index: {}]  }
   0x1   :  { %v251_v0 = vld [vmem:[%s342_s1 + $0x38] sm:$0xff]   ;;  %v252_v1 = vld [vmem:[%s342_s1 + $0x30] sm:$0xff]   ;;  %v253_v2 = vld [vmem:[%s342_s1 + $0x28] sm:$0xff]  }
   0x2   :  { %231 = vmatprep.subr.bf16.mxu0 %v251_v0  ;;  %v254_v3 = vld [vmem:[%s342_s1 + $0x20] sm:$0xff]   ;;  %v255_v5 = vld [vmem:[%s342_s1 + $0x18] sm:$0xff]   ;;  %v256_v6 = vld [vmem:[%s342_s1 + $0x10] sm:$0xff]  }
   0x3   :  { %232 = vmatpush3.bf16.msra.mxu0 %v251_v0  ;;  %v259_v4 = vld [vmem:[%s343_s0] sm:$0xff]   ;;  %v257_v7 = vld [vmem:[%s342_s1 + $0x8] sm:$0xff]  }
   0x4   :  { %233 = vmatprep.subr.bf16.mxu0 %v252_v1  ;;  %247 = vmatprep.mubr.bf16.mxu0 %v259_v4  ;;  %v258_v8 = vld [vmem:[%s342_s1] sm:$0xff]   ;;  %v260_v9 = vld [vmem:[%s343_s0 + $0x8] sm:$0xff]  }
   0x5   :  { %v220_v10 = vld [vmem:[%s344_s2] ss:$0 sm:$0xff] }
   0x7   :  { %234 = vmatpush3.bf16.msra.mxu0 %v252_v1 }
   0x8   :  { %235 = vmatprep.subr.bf16.mxu0 %v253_v2 }
   0xb   :  { %236 = vmatpush3.bf16.msra.mxu0 %v253_v2 }
   0xc   :  { %237 = vmatprep.subr.bf16.mxu0 %v254_v3 }
   0xf   :  { %238 = vmatpush3.bf16.msra.mxu0 %v254_v3 }
  0x10   :  { %239 = vmatprep.subr.bf16.mxu0 %v255_v5 }
  0x13   :  { %240 = vmatpush3.bf16.msra.mxu0 %v255_v5 }
  0x14   :  { %241 = vmatprep.subr.bf16.mxu0 %v256_v6 }
  0x17   :  { %242 = vmatpush3.bf16.msra.mxu0 %v256_v6 }
  0x18   :  { %243 = vmatprep.subr.bf16.mxu0 %v257_v7 }
  0x1b   :  { %244 = vmatpush3.bf16.msra.mxu0 %v257_v7 }
  0x1c   :  { %245 = vmatprep.subr.bf16.mxu0 %v258_v8 }
  0x1f   :  { %246 = vmatpush3.bf16.msra.mxu0 %v258_v8 }
  0x22   :  { %248 = vmatmul.mubr.bf16.vlgmr.msra.gmra.mxu0 %v260_v9 }
  0xe2   :  { %v249_v11 = vpop.f32.mrf.mxu0 }
  0xe3   :  { %v180_v12 = vadd.f32 %v249_v11, %v220_v10 }
  0xe4   :  { %v141_v13 = vpop.f32.mrf.mxu0 }
  0xe5   :  { %v184_v14 = vsub.f32 0.0, %v180_v12  ;;  %v178_v15 = vadd.f32 %v220_v10, %v141_v13 }
  0xe6   :  { %v250_v16 = vpop.f32.mrf.mxu0 }
  0xe7   :  { %v190_v17 = vmul.f32 1.442695, %v184_v14  ;;  %v182_v18 = vsub.f32 0.0, %v178_v15  ;;  %v181_v19 = vadd.f32 %v250_v16, %v220_v10 }
  0xe8   :  { %v144_v20 = vpop.f32.mrf.mxu0 }
  0xe9   :  { %261 = vpow2.f32 %v190_v17  ;;  %v186_v21 = vmul.f32 1.442695, %v182_v18  ;;  %v185_v22 = vsub.f32 0.0, %v181_v19  ;;  %v179_v23 = vadd.f32 %v220_v10, %v144_v20 }
  0xeb   :  { %263 = vpow2.f32 %v186_v21  ;;  %v192_v24 = vmul.f32 1.442695, %v185_v22  ;;  %v183_v25 = vsub.f32 0.0, %v179_v23 }
  0xed   :  { %265 = vpow2.f32 %v192_v24  ;;  %v188_v26 = vmul.f32 1.442695, %v183_v25 }
  0xef   :  { %267 = vpow2.f32 %v188_v26 }
  0xf6   :  { %v262_v27 = vpop.eup %261 }
  0xf7   :  { %v196_v28 = vadd.f32 1.0, %v262_v27 }
  0xf8   :  { %v264_v29 = vpop.eup %263 }
  0xf9   :  { %269 = vrcp.f32 %v196_v28  ;;  %v194_v30 = vadd.f32 1.0, %v264_v29 }
  0xfa   :  { %v266_v31 = vpop.eup %265 }
  0xfb   :  { %271 = vrcp.f32 %v194_v30  ;;  %v197_v32 = vadd.f32 1.0, %v266_v31 }
  0xfc   :  { %v268_v33 = vpop.eup %267 }
  0xfd   :  { %273 = vrcp.f32 %v197_v32  ;;  %v195_v34 = vadd.f32 1.0, %v268_v33 }
  0xff   :  { %275 = vrcp.f32 %v195_v34 }
 0x106   :  { %v270_v35 = vpop.eup %269 }
 0x107   :  { %204 = vst [vmem:[%s345_s3 + $0x10] sm:$0xff] %v270_v35 }
 0x108   :  { %v272_v36 = vpop.eup %271 }
 0x109   :  { %202 = vst [vmem:[%s345_s3] sm:$0xff] %v272_v36 }
 0x10a   :  { %v274_v37 = vpop.eup %273 }
 0x10b   :  { %205 = vst [vmem:[%s345_s3 + $0x18] sm:$0xff] %v274_v37 }
 0x10c   :  { %v276_v38 = vpop.eup %275 }
 0x10d   :  { %203 = vst [vmem:[%s345_s3 + $0x8] sm:$0xff] %v276_v38 }

</bundles_post_ra>
